<compile_context>
chip_gen: v7x
topology: tpu7x:2x2x1
jax: 0.10.0
libtpu: 0.0.40
codegen_flags: <defaults>
</compile_context>

<pallas_src>
import jax
import jax.numpy as jnp
from jax.experimental import pallas as pl
from jax.experimental.pallas import tpu as pltpu


def lm_kernel(ids_ref,          # (B,)    int32  SMEM (scalar prefetch)
              h_ref,            # (B, H)  f32    VMEM, resident
              wg_ref,           # (2H,4H) bf16   VMEM, resident (fused GRU weight)
              bg_ref,           # (1, 4H) f32    VMEM, resident (fused GRU bias)
              wout_ref,         # (H, TV) bf16   VMEM, streamed vocab tile
              bout_ref,         # (1, TV) f32    VMEM, streamed vocab tile
              emb_hbm,          # (V, H)  f32    HBM (pl.ANY), gathered by row DMA
              logp_ref,         # (B, V)  f32    out, resident (written once at the end)
              hnew_ref,         # (B, H)  f32    out, resident
              x_vmem,           # (B, H)  f32    scratch: gathered embeddings
              hn16_vmem,        # (B, H)  bf16   scratch: new hidden as MXU operand
              m_vmem,           # (B, 1)  f32    scratch: running max
              l_vmem,           # (B, 1)  f32    scratch: running sum of exp
              logits_vmem,      # (B, V)  f32    scratch: un-normalized logits
              sem):             # (B,)    DMA semaphores
    j = pl.program_id(0)
    nvt = pl.num_programs(0)
    B, H = h_ref.shape
    TV = wout_ref.shape[1]

    # ---------- step 0: embedding gather (B row DMAs) + fused GRU cell ----------
    @pl.when(j == 0)
    def _():
        for b in range(B):
            pltpu.make_async_copy(emb_hbm.at[pl.ds(ids_ref[b], 1), :],
                                  x_vmem.at[pl.ds(b, 1), :],
                                  sem.at[b]).start()
        for b in range(B):
            pltpu.make_async_copy(emb_hbm.at[pl.ds(ids_ref[b], 1), :],
                                  x_vmem.at[pl.ds(b, 1), :],
                                  sem.at[b]).wait()

        h = h_ref[...]                                                    # (B, H) f32
        xh = jnp.concatenate([x_vmem[...], h], axis=1).astype(jnp.bfloat16)  # (B, 2H)
        # single MXU call; output columns = [ (gi+gh)_r | (gi+gh)_z | gi_n | gh_n ]
        g = jnp.dot(xh, wg_ref[...], preferred_element_type=jnp.float32) + bg_ref[...]
        r = jax.nn.sigmoid(g[:, 0 * H:1 * H])
        z = jax.nn.sigmoid(g[:, 1 * H:2 * H])
        n = jnp.tanh(g[:, 2 * H:3 * H] + r * g[:, 3 * H:4 * H])
        hn = (1.0 - z) * n + z * h                                        # f32 blend
        hnew_ref[...] = hn
        hn16_vmem[...] = hn.astype(jnp.bfloat16)
        m_vmem[...] = jnp.full_like(m_vmem, -jnp.inf)
        l_vmem[...] = jnp.zeros_like(l_vmem)

    # ---------- every step: one streamed vocab tile of the output projection ----------
    logits = jnp.dot(hn16_vmem[...], wout_ref[...],
                     preferred_element_type=jnp.float32) + bout_ref[...]  # (B, TV) f32
    off = pl.multiple_of(j * TV, TV)
    logits_vmem[:, pl.ds(off, TV)] = logits
    # flash-style online softmax statistics
    m_prev = m_vmem[...]
    m_new = jnp.maximum(m_prev, jnp.max(logits, axis=-1, keepdims=True))
    l_vmem[...] = (l_vmem[...] * jnp.exp(m_prev - m_new)
                   + jnp.sum(jnp.exp(logits - m_new), axis=-1, keepdims=True))
    m_vmem[...] = m_new

    # ---------- last step: normalize and emit log-probs (single lane-dense store) ----------
    @pl.when(j == nvt - 1)
    def _():
        logp_ref[...] = logits_vmem[...] - (m_vmem[...] + jnp.log(l_vmem[...]))


def language_model_step(ids, hidden, params, *, tile_v=128):
    """ids: (B,) int32 token indices; hidden: (B, H) float32."""
    B, H = hidden.shape
    V = params["emb"].shape[0]
    assert V % tile_v == 0, "vocab size must be a multiple of the vocab tile"
    nvt = V // tile_v
    # NOTE: for real vocab sizes, size tile_v against VMEM (double-buffered bf16 w_out
    # tile = 2 * H * tile_v * 2 bytes); ~512-2048 keeps v7x's 64 MiB budget comfortable.

    grid_spec = pltpu.PrefetchScalarGridSpec(
        num_scalar_prefetch=1,                 # ids -> SMEM, read directly in the kernel
        grid=(nvt,),
        in_specs=[
            pl.BlockSpec((B, H), lambda j, ids_ref: (0, 0)),          # hidden (resident)
            pl.BlockSpec((2 * H, 4 * H), lambda j, ids_ref: (0, 0)),  # fused GRU weight
            pl.BlockSpec((1, 4 * H), lambda j, ids_ref: (0, 0)),      # fused GRU bias
            pl.BlockSpec((H, tile_v), lambda j, ids_ref: (0, j)),     # w_out tile (streamed)
            pl.BlockSpec((1, tile_v), lambda j, ids_ref: (0, j)),     # b_out tile (streamed)
            pl.BlockSpec(memory_space=pl.ANY),                        # embedding stays in HBM
        ],
        out_specs=(
            pl.BlockSpec((B, V), lambda j, ids_ref: (0, 0)),          # log-probs (resident)
            pl.BlockSpec((B, H), lambda j, ids_ref: (0, 0)),          # new hidden (resident)
        ),
        scratch_shapes=[
            pltpu.VMEM((B, H), jnp.float32),      # gathered embeddings
            pltpu.VMEM((B, H), jnp.bfloat16),     # new hidden as bf16 MXU operand
            pltpu.VMEM((B, 1), jnp.float32),      # running max
            pltpu.VMEM((B, 1), jnp.float32),      # running sum
            pltpu.VMEM((B, V), jnp.float32),      # un-normalized logits
            pltpu.SemaphoreType.DMA((B,)),
        ],
    )

    logp, h_new = pl.pallas_call(
        lm_kernel,
        out_shape=(jax.ShapeDtypeStruct((B, V), jnp.float32),
                   jax.ShapeDtypeStruct((B, H), jnp.float32)),
        grid_spec=grid_spec,
        compiler_params=pltpu.CompilerParams(
            # vocab sweep carries online-softmax state -> sequential
            dimension_semantics=("arbitrary",),
        ),
    )(ids.astype(jnp.int32), hidden,
      params["w_gru"], params["b_gru"],
      params["w_out_t_bf16"], params["b_out"],
      params["emb"])
    return logp, h_new


def init_params(key, vocabulary, hidden_size):
    V, H = vocabulary, hidden_size
    ks = jax.random.split(key, 7)
    s = 0.1
    emb     = (s * jax.random.normal(ks[0], (V, H))).astype(jnp.float32)
    # stored pre-transposed: x @ w_ih_t == x @ weight_ih.T in PyTorch; columns = [r|z|n]
    w_ih_t  = (s * jax.random.normal(ks[1], (H, 3 * H))).astype(jnp.float32)
    w_hh_t  = (s * jax.random.normal(ks[2], (H, 3 * H))).astype(jnp.float32)
    b_ih    = (s * jax.random.normal(ks[3], (1, 3 * H))).astype(jnp.float32)
    b_hh    = (s * jax.random.normal(ks[4], (1, 3 * H))).astype(jnp.float32)
    w_out_t = (s * jax.random.normal(ks[5], (H, V))).astype(jnp.float32)
    b_out   = (s * jax.random.normal(ks[6], (1, V))).astype(jnp.float32)

    # Fused GRU weight for a single MXU call on [x, h] (B, 2H):
    #   cols [0:H)    -> (gi+gh)_r      cols [H:2H)  -> (gi+gh)_z
    #   cols [2H:3H)  -> gi_n           cols [3H:4H) -> gh_n
    zeros = jnp.zeros((H, H), jnp.float32)
    wi_r, wi_z, wi_n = w_ih_t[:, :H], w_ih_t[:, H:2 * H], w_ih_t[:, 2 * H:]
    wh_r, wh_z, wh_n = w_hh_t[:, :H], w_hh_t[:, H:2 * H], w_hh_t[:, 2 * H:]
    w_gru = jnp.concatenate([
        jnp.concatenate([wi_r, wi_z, wi_n, zeros], axis=1),
        jnp.concatenate([wh_r, wh_z, zeros, wh_n], axis=1)], axis=0)      # (2H, 4H)
    b_gru = jnp.concatenate([
        b_ih[:, :H] + b_hh[:, :H],
        b_ih[:, H:2 * H] + b_hh[:, H:2 * H],
        b_ih[:, 2 * H:], b_hh[:, 2 * H:]], axis=1)                        # (1, 4H)

    return {
        # kernel-facing (matmul weights pre-cast to bf16 for the MXU)
        "emb": emb,
        "w_gru": w_gru.astype(jnp.bfloat16),
        "b_gru": b_gru,
        "w_out_t_bf16": w_out_t.astype(jnp.bfloat16),
        "b_out": b_out,
        # reference-facing (PyTorch layout, f32)
        "w_ih_t": w_ih_t, "w_hh_t": w_hh_t, "b_ih": b_ih, "b_hh": b_hh,
        "w_out_t": w_out_t,
    }


def reference_step(ids, hidden, params):
    """Pure-JAX reference matching PyTorch GRUCell / LogSoftmax semantics,
    mirroring the kernel's bf16-operand / f32-accumulate matmul policy."""
    H = hidden.shape[1]

    def mm(a, b):
        return jnp.dot(a.astype(jnp.bfloat16), b.astype(jnp.bfloat16),
                       preferred_element_type=jnp.float32)

    x = params["emb"][ids]
    gi = mm(x, params["w_ih_t"]) + params["b_ih"]
    gh = mm(hidden, params["w_hh_t"]) + params["b_hh"]
    r = jax.nn.sigmoid(gi[:, :H] + gh[:, :H])
    z = jax.nn.sigmoid(gi[:, H:2 * H] + gh[:, H:2 * H])
    n = jnp.tanh(gi[:, 2 * H:] + r * gh[:, 2 * H:])
    h_new = (1.0 - z) * n + z * hidden
    logits = mm(h_new, params["w_out_t"]) + params["b_out"]
    return jax.nn.log_softmax(logits, axis=-1), h_new


if __name__ == "__main__":
    VOCAB, HIDDEN, BATCH, TILE_V = 512, 128, 8, 128   # 128-aligned lane dims

    key = jax.random.PRNGKey(0)
    k_par, k_ids, k_hid = jax.random.split(key, 3)
    params = init_params(k_par, VOCAB, HIDDEN)
    ids = jax.random.randint(k_ids, (BATCH,), 0, VOCAB, dtype=jnp.int32)
    hidden = jax.random.normal(k_hid, (BATCH, HIDDEN), dtype=jnp.float32)

    logp, h_new = language_model_step(ids, hidden, params, tile_v=TILE_V)
    jax.block_until_ready((logp, h_new))

    logp_ref, h_ref = reference_step(ids, hidden, params)
    assert jnp.allclose(h_new, h_ref, atol=2e-3), "hidden mismatch"
    assert jnp.allclose(logp, logp_ref, atol=2e-3), "logprob mismatch"

    print("KERNEL_OK")
</pallas_src>

<mosaic_0001>
module attributes {stable_mosaic.version = 11 : i64} {
  func.func @lm_kernel(%arg0: i32, %arg1: memref<8xi32, #tpu.memory_space<smem>>, %arg2: memref<8x128xf32, #tpu.memory_space<vmem>>, %arg3: memref<256x512xbf16, #tpu.memory_space<vmem>>, %arg4: memref<1x512xf32, #tpu.memory_space<vmem>>, %arg5: memref<128x128xbf16, #tpu.memory_space<vmem>>, %arg6: memref<1x128xf32, #tpu.memory_space<vmem>>, %arg7: memref<512x128xf32, #tpu.memory_space<any>>, %arg8: memref<8x512xf32, #tpu.memory_space<vmem>>, %arg9: memref<8x128xf32, #tpu.memory_space<vmem>>, %arg10: memref<8x128xf32, #tpu.memory_space<vmem>>, %arg11: memref<8x128xbf16, #tpu.memory_space<vmem>>, %arg12: memref<8x1xf32, #tpu.memory_space<vmem>>, %arg13: memref<8x1xf32, #tpu.memory_space<vmem>>, %arg14: memref<8x512xf32, #tpu.memory_space<vmem>>, %arg15: memref<8x!tpu.dma_semaphore, #tpu.memory_space<semaphore_mem>>) attributes {dimension_semantics = [#tpu.dimension_semantics<arbitrary>], iteration_bounds = array<i64: 4>, scalar_prefetch = 1 : i64, scratch_operands = 6 : i64, tpu.core_type = #tpu.core_type<tc>, window_params = [{pipeline_mode = #tpu.pipeline_mode<synchronous>, transform_indices = @transform_0, window_bounds = array<i64: 8, 128>}, {pipeline_mode = #tpu.pipeline_mode<synchronous>, transform_indices = @transform_1, window_bounds = array<i64: 256, 512>}, {pipeline_mode = #tpu.pipeline_mode<synchronous>, transform_indices = @transform_2, window_bounds = array<i64: 1, 512>}, {transform_indices = @transform_3, window_bounds = array<i64: 128, 128>}, {transform_indices = @transform_4, window_bounds = array<i64: 1, 128>}, {}, {pipeline_mode = #tpu.pipeline_mode<synchronous>, transform_indices = @transform_6, window_bounds = array<i64: 8, 512>}, {pipeline_mode = #tpu.pipeline_mode<synchronous>, transform_indices = @transform_7, window_bounds = array<i64: 8, 128>}]} {
    %c0_i32 = arith.constant 0 : i32
    %0 = arith.cmpi eq, %arg0, %c0_i32 : i32
    %1 = arith.extui %0 : i1 to i32
    %c0_i32_0 = arith.constant 0 : i32
    %2 = arith.cmpi ne, %1, %c0_i32_0 : i32
    scf.if %2 {
      %c0_18 = arith.constant 0 : index
      %32 = memref.load %arg1[%c0_18] : memref<8xi32, #tpu.memory_space<smem>>
      %c0_i32_19 = arith.constant 0 : i32
      %c0_i32_20 = arith.constant 0 : i32
      %33 = tpu.memref_slice %arg7[%32, %c0_i32_20] : memref<512x128xf32, #tpu.memory_space<any>> -> memref<1x128xf32, #tpu.memory_space<any>>
      %c0_i32_21 = arith.constant 0 : i32
      %c0_i32_22 = arith.constant 0 : i32
      %34 = tpu.memref_slice %arg10[%c0_i32_21, %c0_i32_22] : memref<8x128xf32, #tpu.memory_space<vmem>> -> memref<1x128xf32, #tpu.memory_space<vmem>>
      %35 = tpu.memref_slice %arg15[%c0_i32_19] : memref<8x!tpu.dma_semaphore, #tpu.memory_space<semaphore_mem>> -> memref<1x!tpu.dma_semaphore, #tpu.memory_space<semaphore_mem>>
      %36 = tpu.memref_squeeze %35 : memref<1x!tpu.dma_semaphore, #tpu.memory_space<semaphore_mem>> -> memref<!tpu.dma_semaphore, #tpu.memory_space<semaphore_mem>>
      tpu.enqueue_dma source(%33 : memref<1x128xf32, #tpu.memory_space<any>>) target(%34 : memref<1x128xf32, #tpu.memory_space<vmem>>) target_semaphore(%36 : memref<!tpu.dma_semaphore, #tpu.memory_space<semaphore_mem>>)
      %c1 = arith.constant 1 : index
      %37 = memref.load %arg1[%c1] : memref<8xi32, #tpu.memory_space<smem>>
      %c1_i32 = arith.constant 1 : i32
      %c0_i32_23 = arith.constant 0 : i32
      %38 = tpu.memref_slice %arg7[%37, %c0_i32_23] : memref<512x128xf32, #tpu.memory_space<any>> -> memref<1x128xf32, #tpu.memory_space<any>>
      %c1_i32_24 = arith.constant 1 : i32
      %c0_i32_25 = arith.constant 0 : i32
      %39 = tpu.memref_slice %arg10[%c1_i32_24, %c0_i32_25] : memref<8x128xf32, #tpu.memory_space<vmem>> -> memref<1x128xf32, #tpu.memory_space<vmem>>
      %40 = tpu.memref_slice %arg15[%c1_i32] : memref<8x!tpu.dma_semaphore, #tpu.memory_space<semaphore_mem>> -> memref<1x!tpu.dma_semaphore, #tpu.memory_space<semaphore_mem>>
      %41 = tpu.memref_squeeze %40 : memref<1x!tpu.dma_semaphore, #tpu.memory_space<semaphore_mem>> -> memref<!tpu.dma_semaphore, #tpu.memory_space<semaphore_mem>>
      tpu.enqueue_dma source(%38 : memref<1x128xf32, #tpu.memory_space<any>>) target(%39 : memref<1x128xf32, #tpu.memory_space<vmem>>) target_semaphore(%41 : memref<!tpu.dma_semaphore, #tpu.memory_space<semaphore_mem>>)
      %c2 = arith.constant 2 : index
      %42 = memref.load %arg1[%c2] : memref<8xi32, #tpu.memory_space<smem>>
      %c2_i32 = arith.constant 2 : i32
      %c0_i32_26 = arith.constant 0 : i32
      %43 = tpu.memref_slice %arg7[%42, %c0_i32_26] : memref<512x128xf32, #tpu.memory_space<any>> -> memref<1x128xf32, #tpu.memory_space<any>>
      %c2_i32_27 = arith.constant 2 : i32
      %c0_i32_28 = arith.constant 0 : i32
      %44 = tpu.memref_slice %arg10[%c2_i32_27, %c0_i32_28] : memref<8x128xf32, #tpu.memory_space<vmem>> -> memref<1x128xf32, #tpu.memory_space<vmem>>
      %45 = tpu.memref_slice %arg15[%c2_i32] : memref<8x!tpu.dma_semaphore, #tpu.memory_space<semaphore_mem>> -> memref<1x!tpu.dma_semaphore, #tpu.memory_space<semaphore_mem>>
      %46 = tpu.memref_squeeze %45 : memref<1x!tpu.dma_semaphore, #tpu.memory_space<semaphore_mem>> -> memref<!tpu.dma_semaphore, #tpu.memory_space<semaphore_mem>>
      tpu.enqueue_dma source(%43 : memref<1x128xf32, #tpu.memory_space<any>>) target(%44 : memref<1x128xf32, #tpu.memory_space<vmem>>) target_semaphore(%46 : memref<!tpu.dma_semaphore, #tpu.memory_space<semaphore_mem>>)
      %c3 = arith.constant 3 : index
      %47 = memref.load %arg1[%c3] : memref<8xi32, #tpu.memory_space<smem>>
      %c3_i32_29 = arith.constant 3 : i32
      %c0_i32_30 = arith.constant 0 : i32
      %48 = tpu.memref_slice %arg7[%47, %c0_i32_30] : memref<512x128xf32, #tpu.memory_space<any>> -> memref<1x128xf32, #tpu.memory_space<any>>
      %c3_i32_31 = arith.constant 3 : i32
      %c0_i32_32 = arith.constant 0 : i32
      %49 = tpu.memref_slice %arg10[%c3_i32_31, %c0_i32_32] : memref<8x128xf32, #tpu.memory_space<vmem>> -> memref<1x128xf32, #tpu.memory_space<vmem>>
      %50 = tpu.memref_slice %arg15[%c3_i32_29] : memref<8x!tpu.dma_semaphore, #tpu.memory_space<semaphore_mem>> -> memref<1x!tpu.dma_semaphore, #tpu.memory_space<semaphore_mem>>
      %51 = tpu.memref_squeeze %50 : memref<1x!tpu.dma_semaphore, #tpu.memory_space<semaphore_mem>> -> memref<!tpu.dma_semaphore, #tpu.memory_space<semaphore_mem>>
      tpu.enqueue_dma source(%48 : memref<1x128xf32, #tpu.memory_space<any>>) target(%49 : memref<1x128xf32, #tpu.memory_space<vmem>>) target_semaphore(%51 : memref<!tpu.dma_semaphore, #tpu.memory_space<semaphore_mem>>)
      %c4 = arith.constant 4 : index
      %52 = memref.load %arg1[%c4] : memref<8xi32, #tpu.memory_space<smem>>
      %c4_i32 = arith.constant 4 : i32
      %c0_i32_33 = arith.constant 0 : i32
      %53 = tpu.memref_slice %arg7[%52, %c0_i32_33] : memref<512x128xf32, #tpu.memory_space<any>> -> memref<1x128xf32, #tpu.memory_space<any>>
      %c4_i32_34 = arith.constant 4 : i32
      %c0_i32_35 = arith.constant 0 : i32
      %54 = tpu.memref_slice %arg10[%c4_i32_34, %c0_i32_35] : memref<8x128xf32, #tpu.memory_space<vmem>> -> memref<1x128xf32, #tpu.memory_space<vmem>>
      %55 = tpu.memref_slice %arg15[%c4_i32] : memref<8x!tpu.dma_semaphore, #tpu.memory_space<semaphore_mem>> -> memref<1x!tpu.dma_semaphore, #tpu.memory_space<semaphore_mem>>
      %56 = tpu.memref_squeeze %55 : memref<1x!tpu.dma_semaphore, #tpu.memory_space<semaphore_mem>> -> memref<!tpu.dma_semaphore, #tpu.memory_space<semaphore_mem>>
      tpu.enqueue_dma source(%53 : memref<1x128xf32, #tpu.memory_space<any>>) target(%54 : memref<1x128xf32, #tpu.memory_space<vmem>>) target_semaphore(%56 : memref<!tpu.dma_semaphore, #tpu.memory_space<semaphore_mem>>)
      %c5 = arith.constant 5 : index
      %57 = memref.load %arg1[%c5] : memref<8xi32, #tpu.memory_space<smem>>
      %c5_i32 = arith.constant 5 : i32
      %c0_i32_36 = arith.constant 0 : i32
      %58 = tpu.memref_slice %arg7[%57, %c0_i32_36] : memref<512x128xf32, #tpu.memory_space<any>> -> memref<1x128xf32, #tpu.memory_space<any>>
      %c5_i32_37 = arith.constant 5 : i32
      %c0_i32_38 = arith.constant 0 : i32
      %59 = tpu.memref_slice %arg10[%c5_i32_37, %c0_i32_38] : memref<8x128xf32, #tpu.memory_space<vmem>> -> memref<1x128xf32, #tpu.memory_space<vmem>>
      %60 = tpu.memref_slice %arg15[%c5_i32] : memref<8x!tpu.dma_semaphore, #tpu.memory_space<semaphore_mem>> -> memref<1x!tpu.dma_semaphore, #tpu.memory_space<semaphore_mem>>
      %61 = tpu.memref_squeeze %60 : memref<1x!tpu.dma_semaphore, #tpu.memory_space<semaphore_mem>> -> memref<!tpu.dma_semaphore, #tpu.memory_space<semaphore_mem>>
      tpu.enqueue_dma source(%58 : memref<1x128xf32, #tpu.memory_space<any>>) target(%59 : memref<1x128xf32, #tpu.memory_space<vmem>>) target_semaphore(%61 : memref<!tpu.dma_semaphore, #tpu.memory_space<semaphore_mem>>)
      %c6 = arith.constant 6 : index
      %62 = memref.load %arg1[%c6] : memref<8xi32, #tpu.memory_space<smem>>
      %c6_i32 = arith.constant 6 : i32
      %c0_i32_39 = arith.constant 0 : i32
      %63 = tpu.memref_slice %arg7[%62, %c0_i32_39] : memref<512x128xf32, #tpu.memory_space<any>> -> memref<1x128xf32, #tpu.memory_space<any>>
      %c6_i32_40 = arith.constant 6 : i32
      %c0_i32_41 = arith.constant 0 : i32
      %64 = tpu.memref_slice %arg10[%c6_i32_40, %c0_i32_41] : memref<8x128xf32, #tpu.memory_space<vmem>> -> memref<1x128xf32, #tpu.memory_space<vmem>>
      %65 = tpu.memref_slice %arg15[%c6_i32] : memref<8x!tpu.dma_semaphore, #tpu.memory_space<semaphore_mem>> -> memref<1x!tpu.dma_semaphore, #tpu.memory_space<semaphore_mem>>
      %66 = tpu.memref_squeeze %65 : memref<1x!tpu.dma_semaphore, #tpu.memory_space<semaphore_mem>> -> memref<!tpu.dma_semaphore, #tpu.memory_space<semaphore_mem>>
      tpu.enqueue_dma source(%63 : memref<1x128xf32, #tpu.memory_space<any>>) target(%64 : memref<1x128xf32, #tpu.memory_space<vmem>>) target_semaphore(%66 : memref<!tpu.dma_semaphore, #tpu.memory_space<semaphore_mem>>)
      %c7 = arith.constant 7 : index
      %67 = memref.load %arg1[%c7] : memref<8xi32, #tpu.memory_space<smem>>
      %c7_i32 = arith.constant 7 : i32
      %c0_i32_42 = arith.constant 0 : i32
      %68 = tpu.memref_slice %arg7[%67, %c0_i32_42] : memref<512x128xf32, #tpu.memory_space<any>> -> memref<1x128xf32, #tpu.memory_space<any>>
      %c7_i32_43 = arith.constant 7 : i32
      %c0_i32_44 = arith.constant 0 : i32
      %69 = tpu.memref_slice %arg10[%c7_i32_43, %c0_i32_44] : memref<8x128xf32, #tpu.memory_space<vmem>> -> memref<1x128xf32, #tpu.memory_space<vmem>>
      %70 = tpu.memref_slice %arg15[%c7_i32] : memref<8x!tpu.dma_semaphore, #tpu.memory_space<semaphore_mem>> -> memref<1x!tpu.dma_semaphore, #tpu.memory_space<semaphore_mem>>
      %71 = tpu.memref_squeeze %70 : memref<1x!tpu.dma_semaphore, #tpu.memory_space<semaphore_mem>> -> memref<!tpu.dma_semaphore, #tpu.memory_space<semaphore_mem>>
      tpu.enqueue_dma source(%68 : memref<1x128xf32, #tpu.memory_space<any>>) target(%69 : memref<1x128xf32, #tpu.memory_space<vmem>>) target_semaphore(%71 : memref<!tpu.dma_semaphore, #tpu.memory_space<semaphore_mem>>)
      %c0_45 = arith.constant 0 : index
      %72 = memref.load %arg1[%c0_45] : memref<8xi32, #tpu.memory_space<smem>>
      %c0_i32_46 = arith.constant 0 : i32
      %c0_i32_47 = arith.constant 0 : i32
      %73 = tpu.memref_slice %arg7[%72, %c0_i32_47] : memref<512x128xf32, #tpu.memory_space<any>> -> memref<1x128xf32, #tpu.memory_space<any>>
      %c0_i32_48 = arith.constant 0 : i32
      %c0_i32_49 = arith.constant 0 : i32
      %74 = tpu.memref_slice %arg10[%c0_i32_48, %c0_i32_49] : memref<8x128xf32, #tpu.memory_space<vmem>> -> memref<1x128xf32, #tpu.memory_space<vmem>>
      %75 = tpu.memref_slice %arg15[%c0_i32_46] : memref<8x!tpu.dma_semaphore, #tpu.memory_space<semaphore_mem>> -> memref<1x!tpu.dma_semaphore, #tpu.memory_space<semaphore_mem>>
      %76 = tpu.memref_squeeze %75 : memref<1x!tpu.dma_semaphore, #tpu.memory_space<semaphore_mem>> -> memref<!tpu.dma_semaphore, #tpu.memory_space<semaphore_mem>>
      tpu.wait_dma2 semaphore(%76 : memref<!tpu.dma_semaphore, #tpu.memory_space<semaphore_mem>>) src(%73 : memref<1x128xf32, #tpu.memory_space<any>>) dst(%74 : memref<1x128xf32, #tpu.memory_space<vmem>>)
      %c1_50 = arith.constant 1 : index
      %77 = memref.load %arg1[%c1_50] : memref<8xi32, #tpu.memory_space<smem>>
      %c1_i32_51 = arith.constant 1 : i32
      %c0_i32_52 = arith.constant 0 : i32
      %78 = tpu.memref_slice %arg7[%77, %c0_i32_52] : memref<512x128xf32, #tpu.memory_space<any>> -> memref<1x128xf32, #tpu.memory_space<any>>
      %c1_i32_53 = arith.constant 1 : i32
      %c0_i32_54 = arith.constant 0 : i32
      %79 = tpu.memref_slice %arg10[%c1_i32_53, %c0_i32_54] : memref<8x128xf32, #tpu.memory_space<vmem>> -> memref<1x128xf32, #tpu.memory_space<vmem>>
      %80 = tpu.memref_slice %arg15[%c1_i32_51] : memref<8x!tpu.dma_semaphore, #tpu.memory_space<semaphore_mem>> -> memref<1x!tpu.dma_semaphore, #tpu.memory_space<semaphore_mem>>
      %81 = tpu.memref_squeeze %80 : memref<1x!tpu.dma_semaphore, #tpu.memory_space<semaphore_mem>> -> memref<!tpu.dma_semaphore, #tpu.memory_space<semaphore_mem>>
      tpu.wait_dma2 semaphore(%81 : memref<!tpu.dma_semaphore, #tpu.memory_space<semaphore_mem>>) src(%78 : memref<1x128xf32, #tpu.memory_space<any>>) dst(%79 : memref<1x128xf32, #tpu.memory_space<vmem>>)
      %c2_55 = arith.constant 2 : index
      %82 = memref.load %arg1[%c2_55] : memref<8xi32, #tpu.memory_space<smem>>
      %c2_i32_56 = arith.constant 2 : i32
      %c0_i32_57 = arith.constant 0 : i32
      %83 = tpu.memref_slice %arg7[%82, %c0_i32_57] : memref<512x128xf32, #tpu.memory_space<any>> -> memref<1x128xf32, #tpu.memory_space<any>>
      %c2_i32_58 = arith.constant 2 : i32
      %c0_i32_59 = arith.constant 0 : i32
      %84 = tpu.memref_slice %arg10[%c2_i32_58, %c0_i32_59] : memref<8x128xf32, #tpu.memory_space<vmem>> -> memref<1x128xf32, #tpu.memory_space<vmem>>
      %85 = tpu.memref_slice %arg15[%c2_i32_56] : memref<8x!tpu.dma_semaphore, #tpu.memory_space<semaphore_mem>> -> memref<1x!tpu.dma_semaphore, #tpu.memory_space<semaphore_mem>>
      %86 = tpu.memref_squeeze %85 : memref<1x!tpu.dma_semaphore, #tpu.memory_space<semaphore_mem>> -> memref<!tpu.dma_semaphore, #tpu.memory_space<semaphore_mem>>
      tpu.wait_dma2 semaphore(%86 : memref<!tpu.dma_semaphore, #tpu.memory_space<semaphore_mem>>) src(%83 : memref<1x128xf32, #tpu.memory_space<any>>) dst(%84 : memref<1x128xf32, #tpu.memory_space<vmem>>)
      %c3_60 = arith.constant 3 : index
      %87 = memref.load %arg1[%c3_60] : memref<8xi32, #tpu.memory_space<smem>>
      %c3_i32_61 = arith.constant 3 : i32
      %c0_i32_62 = arith.constant 0 : i32
      %88 = tpu.memref_slice %arg7[%87, %c0_i32_62] : memref<512x128xf32, #tpu.memory_space<any>> -> memref<1x128xf32, #tpu.memory_space<any>>
      %c3_i32_63 = arith.constant 3 : i32
      %c0_i32_64 = arith.constant 0 : i32
      %89 = tpu.memref_slice %arg10[%c3_i32_63, %c0_i32_64] : memref<8x128xf32, #tpu.memory_space<vmem>> -> memref<1x128xf32, #tpu.memory_space<vmem>>
      %90 = tpu.memref_slice %arg15[%c3_i32_61] : memref<8x!tpu.dma_semaphore, #tpu.memory_space<semaphore_mem>> -> memref<1x!tpu.dma_semaphore, #tpu.memory_space<semaphore_mem>>
      %91 = tpu.memref_squeeze %90 : memref<1x!tpu.dma_semaphore, #tpu.memory_space<semaphore_mem>> -> memref<!tpu.dma_semaphore, #tpu.memory_space<semaphore_mem>>
      tpu.wait_dma2 semaphore(%91 : memref<!tpu.dma_semaphore, #tpu.memory_space<semaphore_mem>>) src(%88 : memref<1x128xf32, #tpu.memory_space<any>>) dst(%89 : memref<1x128xf32, #tpu.memory_space<vmem>>)
      %c4_65 = arith.constant 4 : index
      %92 = memref.load %arg1[%c4_65] : memref<8xi32, #tpu.memory_space<smem>>
      %c4_i32_66 = arith.constant 4 : i32
      %c0_i32_67 = arith.constant 0 : i32
      %93 = tpu.memref_slice %arg7[%92, %c0_i32_67] : memref<512x128xf32, #tpu.memory_space<any>> -> memref<1x128xf32, #tpu.memory_space<any>>
      %c4_i32_68 = arith.constant 4 : i32
      %c0_i32_69 = arith.constant 0 : i32
      %94 = tpu.memref_slice %arg10[%c4_i32_68, %c0_i32_69] : memref<8x128xf32, #tpu.memory_space<vmem>> -> memref<1x128xf32, #tpu.memory_space<vmem>>
      %95 = tpu.memref_slice %arg15[%c4_i32_66] : memref<8x!tpu.dma_semaphore, #tpu.memory_space<semaphore_mem>> -> memref<1x!tpu.dma_semaphore, #tpu.memory_space<semaphore_mem>>
      %96 = tpu.memref_squeeze %95 : memref<1x!tpu.dma_semaphore, #tpu.memory_space<semaphore_mem>> -> memref<!tpu.dma_semaphore, #tpu.memory_space<semaphore_mem>>
      tpu.wait_dma2 semaphore(%96 : memref<!tpu.dma_semaphore, #tpu.memory_space<semaphore_mem>>) src(%93 : memref<1x128xf32, #tpu.memory_space<any>>) dst(%94 : memref<1x128xf32, #tpu.memory_space<vmem>>)
      %c5_70 = arith.constant 5 : index
      %97 = memref.load %arg1[%c5_70] : memref<8xi32, #tpu.memory_space<smem>>
      %c5_i32_71 = arith.constant 5 : i32
      %c0_i32_72 = arith.constant 0 : i32
      %98 = tpu.memref_slice %arg7[%97, %c0_i32_72] : memref<512x128xf32, #tpu.memory_space<any>> -> memref<1x128xf32, #tpu.memory_space<any>>
      %c5_i32_73 = arith.constant 5 : i32
      %c0_i32_74 = arith.constant 0 : i32
      %99 = tpu.memref_slice %arg10[%c5_i32_73, %c0_i32_74] : memref<8x128xf32, #tpu.memory_space<vmem>> -> memref<1x128xf32, #tpu.memory_space<vmem>>
      %100 = tpu.memref_slice %arg15[%c5_i32_71] : memref<8x!tpu.dma_semaphore, #tpu.memory_space<semaphore_mem>> -> memref<1x!tpu.dma_semaphore, #tpu.memory_space<semaphore_mem>>
      %101 = tpu.memref_squeeze %100 : memref<1x!tpu.dma_semaphore, #tpu.memory_space<semaphore_mem>> -> memref<!tpu.dma_semaphore, #tpu.memory_space<semaphore_mem>>
      tpu.wait_dma2 semaphore(%101 : memref<!tpu.dma_semaphore, #tpu.memory_space<semaphore_mem>>) src(%98 : memref<1x128xf32, #tpu.memory_space<any>>) dst(%99 : memref<1x128xf32, #tpu.memory_space<vmem>>)
      %c6_75 = arith.constant 6 : index
      %102 = memref.load %arg1[%c6_75] : memref<8xi32, #tpu.memory_space<smem>>
      %c6_i32_76 = arith.constant 6 : i32
      %c0_i32_77 = arith.constant 0 : i32
      %103 = tpu.memref_slice %arg7[%102, %c0_i32_77] : memref<512x128xf32, #tpu.memory_space<any>> -> memref<1x128xf32, #tpu.memory_space<any>>
      %c6_i32_78 = arith.constant 6 : i32
      %c0_i32_79 = arith.constant 0 : i32
      %104 = tpu.memref_slice %arg10[%c6_i32_78, %c0_i32_79] : memref<8x128xf32, #tpu.memory_space<vmem>> -> memref<1x128xf32, #tpu.memory_space<vmem>>
      %105 = tpu.memref_slice %arg15[%c6_i32_76] : memref<8x!tpu.dma_semaphore, #tpu.memory_space<semaphore_mem>> -> memref<1x!tpu.dma_semaphore, #tpu.memory_space<semaphore_mem>>
      %106 = tpu.memref_squeeze %105 : memref<1x!tpu.dma_semaphore, #tpu.memory_space<semaphore_mem>> -> memref<!tpu.dma_semaphore, #tpu.memory_space<semaphore_mem>>
      tpu.wait_dma2 semaphore(%106 : memref<!tpu.dma_semaphore, #tpu.memory_space<semaphore_mem>>) src(%103 : memref<1x128xf32, #tpu.memory_space<any>>) dst(%104 : memref<1x128xf32, #tpu.memory_space<vmem>>)
      %c7_80 = arith.constant 7 : index
      %107 = memref.load %arg1[%c7_80] : memref<8xi32, #tpu.memory_space<smem>>
      %c7_i32_81 = arith.constant 7 : i32
      %c0_i32_82 = arith.constant 0 : i32
      %108 = tpu.memref_slice %arg7[%107, %c0_i32_82] : memref<512x128xf32, #tpu.memory_space<any>> -> memref<1x128xf32, #tpu.memory_space<any>>
      %c7_i32_83 = arith.constant 7 : i32
      %c0_i32_84 = arith.constant 0 : i32
      %109 = tpu.memref_slice %arg10[%c7_i32_83, %c0_i32_84] : memref<8x128xf32, #tpu.memory_space<vmem>> -> memref<1x128xf32, #tpu.memory_space<vmem>>
      %110 = tpu.memref_slice %arg15[%c7_i32_81] : memref<8x!tpu.dma_semaphore, #tpu.memory_space<semaphore_mem>> -> memref<1x!tpu.dma_semaphore, #tpu.memory_space<semaphore_mem>>
      %111 = tpu.memref_squeeze %110 : memref<1x!tpu.dma_semaphore, #tpu.memory_space<semaphore_mem>> -> memref<!tpu.dma_semaphore, #tpu.memory_space<semaphore_mem>>
      tpu.wait_dma2 semaphore(%111 : memref<!tpu.dma_semaphore, #tpu.memory_space<semaphore_mem>>) src(%108 : memref<1x128xf32, #tpu.memory_space<any>>) dst(%109 : memref<1x128xf32, #tpu.memory_space<vmem>>)
      %c0_85 = arith.constant 0 : index
      %c0_86 = arith.constant 0 : index
      %112 = vector.load %arg2[%c0_85, %c0_86] : memref<8x128xf32, #tpu.memory_space<vmem>>, vector<8x128xf32>
      %c0_87 = arith.constant 0 : index
      %c0_88 = arith.constant 0 : index
      %113 = vector.load %arg10[%c0_87, %c0_88] : memref<8x128xf32, #tpu.memory_space<vmem>>, vector<8x128xf32>
      %114 = tpu.concatenate %113, %112 in 1 : vector<8x128xf32>, vector<8x128xf32> -> vector<8x256xf32>
      %115 = arith.truncf %114 : vector<8x256xf32> to vector<8x256xbf16>
      %c0_89 = arith.constant 0 : index
      %c0_90 = arith.constant 0 : index
      %116 = vector.load %arg3[%c0_89, %c0_90] : memref<256x512xbf16, #tpu.memory_space<vmem>>, vector<256x512xbf16>
      %cst_91 = arith.constant dense<0.000000e+00> : vector<8x512xf32>
      %117 = tpu.matmul %115, %116, %cst_91 {dimension_numbers = #tpu.dot_dimension_numbers<[1], [0], [0], [1], [0, 0, 1, 1], [], []>} : vector<8x256xbf16>, vector<256x512xbf16>, vector<8x512xf32> -> vector<8x512xf32>
      %c0_92 = arith.constant 0 : index
      %c0_93 = arith.constant 0 : index
      %118 = vector.load %arg4[%c0_92, %c0_93] : memref<1x512xf32, #tpu.memory_space<vmem>>, vector<1x512xf32>
      %119 = vector.broadcast %118 : vector<1x512xf32> to vector<8x512xf32>
      %120 = arith.addf %117, %119 : vector<8x512xf32>
      %121 = vector.extract_strided_slice %120 {offsets = [0, 0], sizes = [8, 128], strides = [1, 1]} : vector<8x512xf32> to vector<8x128xf32>
      %122 = arith.negf %121 : vector<8x128xf32>
      %123 = math.exp %122 : vector<8x128xf32>
      %cst_94 = arith.constant 1.000000e+00 : f32
      %124 = vector.broadcast %cst_94 : f32 to vector<8x128xf32>
      %125 = arith.addf %124, %123 : vector<8x128xf32>
      %126 = arith.divf %124, %125 : vector<8x128xf32>
      %127 = vector.extract_strided_slice %120 {offsets = [0, 128], sizes = [8, 128], strides = [1, 1]} : vector<8x512xf32> to vector<8x128xf32>
      %128 = arith.negf %127 : vector<8x128xf32>
      %129 = math.exp %128 : vector<8x128xf32>
      %cst_95 = arith.constant 1.000000e+00 : f32
      %130 = vector.broadcast %cst_95 : f32 to vector<8x128xf32>
      %131 = arith.addf %130, %129 : vector<8x128xf32>
      %132 = arith.divf %130, %131 : vector<8x128xf32>
      %133 = vector.extract_strided_slice %120 {offsets = [0, 256], sizes = [8, 128], strides = [1, 1]} : vector<8x512xf32> to vector<8x128xf32>
      %134 = vector.extract_strided_slice %120 {offsets = [0, 384], sizes = [8, 128], strides = [1, 1]} : vector<8x512xf32> to vector<8x128xf32>
      %135 = arith.mulf %126, %134 : vector<8x128xf32>
      %136 = arith.addf %133, %135 : vector<8x128xf32>
      %137 = math.tanh %136 : vector<8x128xf32>
      %cst_96 = arith.constant 1.000000e+00 : f32
      %138 = vector.broadcast %cst_96 : f32 to vector<8x128xf32>
      %139 = arith.subf %138, %132 : vector<8x128xf32>
      %140 = arith.mulf %139, %137 : vector<8x128xf32>
      %141 = arith.mulf %132, %112 : vector<8x128xf32>
      %142 = arith.addf %140, %141 : vector<8x128xf32>
      %c0_97 = arith.constant 0 : index
      %c0_98 = arith.constant 0 : index
      %143 = vector.load %arg9[%c0_97, %c0_98] : memref<8x128xf32, #tpu.memory_space<vmem>>, vector<8x128xf32>
      tpu.vector_store %arg9[%c0_97, %c0_98], %142 {strides = array<i32>} : memref<8x128xf32, #tpu.memory_space<vmem>>, vector<8x128xf32>,
      %144 = arith.truncf %142 : vector<8x128xf32> to vector<8x128xbf16>
      %c0_99 = arith.constant 0 : index
      %c0_100 = arith.constant 0 : index
      %145 = vector.load %arg11[%c0_99, %c0_100] : memref<8x128xbf16, #tpu.memory_space<vmem>>, vector<8x128xbf16>
      tpu.vector_store %arg11[%c0_99, %c0_100], %144 {strides = array<i32>} : memref<8x128xbf16, #tpu.memory_space<vmem>>, vector<8x128xbf16>,
      %cst_101 = arith.constant 0xFF800000 : f32
      %146 = vector.broadcast %cst_101 : f32 to vector<8x1xf32>
      %c0_102 = arith.constant 0 : index
      %c0_103 = arith.constant 0 : index
      %147 = vector.load %arg12[%c0_102, %c0_103] : memref<8x1xf32, #tpu.memory_space<vmem>>, vector<8x1xf32>
      tpu.vector_store %arg12[%c0_102, %c0_103], %146 {strides = array<i32>} : memref<8x1xf32, #tpu.memory_space<vmem>>, vector<8x1xf32>,
      %cst_104 = arith.constant 0.000000e+00 : f32
      %148 = vector.broadcast %cst_104 : f32 to vector<8x1xf32>
      %c0_105 = arith.constant 0 : index
      %c0_106 = arith.constant 0 : index
      %149 = vector.load %arg13[%c0_105, %c0_106] : memref<8x1xf32, #tpu.memory_space<vmem>>, vector<8x1xf32>
      tpu.vector_store %arg13[%c0_105, %c0_106], %148 {strides = array<i32>} : memref<8x1xf32, #tpu.memory_space<vmem>>, vector<8x1xf32>,
    } else {
    }
    %c0 = arith.constant 0 : index
    %c0_1 = arith.constant 0 : index
    %3 = vector.load %arg11[%c0, %c0_1] : memref<8x128xbf16, #tpu.memory_space<vmem>>, vector<8x128xbf16>
    %c0_2 = arith.constant 0 : index
    %c0_3 = arith.constant 0 : index
    %4 = vector.load %arg5[%c0_2, %c0_3] : memref<128x128xbf16, #tpu.memory_space<vmem>>, vector<128x128xbf16>
    %cst = arith.constant dense<0.000000e+00> : vector<8x128xf32>
    %5 = tpu.matmul %3, %4, %cst {dimension_numbers = #tpu.dot_dimension_numbers<[1], [0], [0], [1], [0, 0, 1, 1], [], []>} : vector<8x128xbf16>, vector<128x128xbf16>, vector<8x128xf32> -> vector<8x128xf32>
    %c0_4 = arith.constant 0 : index
    %c0_5 = arith.constant 0 : index
    %6 = vector.load %arg6[%c0_4, %c0_5] : memref<1x128xf32, #tpu.memory_space<vmem>>, vector<1x128xf32>
    %7 = vector.broadcast %6 : vector<1x128xf32> to vector<8x128xf32>
    %8 = arith.addf %5, %7 : vector<8x128xf32>
    %c128_i32 = arith.constant 128 : i32
    %9 = arith.muli %arg0, %c128_i32 : i32
    %10 = tpu.assume_multiple %9, 128 : i32
    %c0_6 = arith.constant 0 : index
    %11 = arith.index_cast %10 : i32 to index
    %12 = vector.load %arg14[%c0_6, %11] : memref<8x512xf32, #tpu.memory_space<vmem>>, vector<8x128xf32>
    tpu.vector_store %arg14[%c0_6, %11], %8 {strides = array<i32>} : memref<8x512xf32, #tpu.memory_space<vmem>>, vector<8x128xf32>,
    %c0_7 = arith.constant 0 : index
    %c0_8 = arith.constant 0 : index
    %13 = vector.load %arg12[%c0_7, %c0_8] : memref<8x1xf32, #tpu.memory_space<vmem>>, vector<8x1xf32>
    %cst_9 = arith.constant dense<0xFF800000> : vector<8xf32>
    %14 = vector.multi_reduction <maximumf>, %8, %cst_9 [1] : vector<8x128xf32> to vector<8xf32>
    %15 = vector.shape_cast %14 : vector<8xf32> to vector<8x1xf32>
    %16 = arith.maximumf %13, %15 : vector<8x1xf32>
    %c0_10 = arith.constant 0 : index
    %c0_11 = arith.constant 0 : index
    %17 = vector.load %arg13[%c0_10, %c0_11] : memref<8x1xf32, #tpu.memory_space<vmem>>, vector<8x1xf32>
    %18 = arith.subf %13, %16 : vector<8x1xf32>
    %19 = math.exp %18 : vector<8x1xf32>
    %20 = arith.mulf %17, %19 : vector<8x1xf32>
    %21 = vector.broadcast %16 : vector<8x1xf32> to vector<8x128xf32>
    %22 = arith.subf %8, %21 : vector<8x128xf32>
    %23 = math.exp %22 : vector<8x128xf32>
    %cst_12 = arith.constant dense<0.000000e+00> : vector<8xf32>
    %24 = vector.multi_reduction <add>, %23, %cst_12 [1] : vector<8x128xf32> to vector<8xf32>
    %25 = vector.shape_cast %24 : vector<8xf32> to vector<8x1xf32>
    %26 = arith.addf %20, %25 : vector<8x1xf32>
    %c0_13 = arith.constant 0 : index
    %c0_14 = arith.constant 0 : index
    %27 = vector.load %arg13[%c0_13, %c0_14] : memref<8x1xf32, #tpu.memory_space<vmem>>, vector<8x1xf32>
    tpu.vector_store %arg13[%c0_13, %c0_14], %26 {strides = array<i32>} : memref<8x1xf32, #tpu.memory_space<vmem>>, vector<8x1xf32>,
    %c0_15 = arith.constant 0 : index
    %c0_16 = arith.constant 0 : index
    %28 = vector.load %arg12[%c0_15, %c0_16] : memref<8x1xf32, #tpu.memory_space<vmem>>, vector<8x1xf32>
    tpu.vector_store %arg12[%c0_15, %c0_16], %16 {strides = array<i32>} : memref<8x1xf32, #tpu.memory_space<vmem>>, vector<8x1xf32>,
    %c3_i32 = arith.constant 3 : i32
    %29 = arith.cmpi eq, %arg0, %c3_i32 : i32
    %30 = arith.extui %29 : i1 to i32
    %c0_i32_17 = arith.constant 0 : i32
    %31 = arith.cmpi ne, %30, %c0_i32_17 : i32
    scf.if %31 {
      %c0_18 = arith.constant 0 : index
      %c0_19 = arith.constant 0 : index
      %32 = vector.load %arg14[%c0_18, %c0_19] : memref<8x512xf32, #tpu.memory_space<vmem>>, vector<8x512xf32>
      %c0_20 = arith.constant 0 : index
      %c0_21 = arith.constant 0 : index
      %33 = vector.load %arg12[%c0_20, %c0_21] : memref<8x1xf32, #tpu.memory_space<vmem>>, vector<8x1xf32>
      %c0_22 = arith.constant 0 : index
      %c0_23 = arith.constant 0 : index
      %34 = vector.load %arg13[%c0_22, %c0_23] : memref<8x1xf32, #tpu.memory_space<vmem>>, vector<8x1xf32>
      %35 = math.log %34 : vector<8x1xf32>
      %36 = arith.addf %33, %35 : vector<8x1xf32>
      %37 = vector.broadcast %36 : vector<8x1xf32> to vector<8x512xf32>
      %38 = arith.subf %32, %37 : vector<8x512xf32>
      %c0_24 = arith.constant 0 : index
      %c0_25 = arith.constant 0 : index
      %39 = vector.load %arg8[%c0_24, %c0_25] : memref<8x512xf32, #tpu.memory_space<vmem>>, vector<8x512xf32>
      tpu.vector_store %arg8[%c0_24, %c0_25], %38 {strides = array<i32>} : memref<8x512xf32, #tpu.memory_space<vmem>>, vector<8x512xf32>,
    } else {
    }
    return
  }
  func.func @transform_0(%arg0: i32, %arg1: memref<8xi32, #tpu.memory_space<smem>>) -> (i32, i32) {
    %c0_i32 = arith.constant 0 : i32
    %c0_i32_0 = arith.constant 0 : i32
    %c0_i32_1 = arith.constant 0 : i32
    return %c0_i32, %c0_i32_0 : i32, i32
  }
  func.func @transform_1(%arg0: i32, %arg1: memref<8xi32, #tpu.memory_space<smem>>) -> (i32, i32) {
    %c0_i32 = arith.constant 0 : i32
    %c0_i32_0 = arith.constant 0 : i32
    %c0_i32_1 = arith.constant 0 : i32
    return %c0_i32, %c0_i32_0 : i32, i32
  }
  func.func @transform_2(%arg0: i32, %arg1: memref<8xi32, #tpu.memory_space<smem>>) -> (i32, i32) {
    %c0_i32 = arith.constant 0 : i32
    %c0_i32_0 = arith.constant 0 : i32
    %c0_i32_1 = arith.constant 0 : i32
    return %c0_i32, %c0_i32_0 : i32, i32
  }
  func.func @transform_3(%arg0: i32, %arg1: memref<8xi32, #tpu.memory_space<smem>>) -> (i32, i32) {
    %c0_i32 = arith.constant 0 : i32
    %c0_i32_0 = arith.constant 0 : i32
    return %c0_i32, %arg0 : i32, i32
  }
  func.func @transform_4(%arg0: i32, %arg1: memref<8xi32, #tpu.memory_space<smem>>) -> (i32, i32) {
    %c0_i32 = arith.constant 0 : i32
    %c0_i32_0 = arith.constant 0 : i32
    return %c0_i32, %arg0 : i32, i32
  }
  func.func @transform_6(%arg0: i32, %arg1: memref<8xi32, #tpu.memory_space<smem>>) -> (i32, i32) {
    %c0_i32 = arith.constant 0 : i32
    %c0_i32_0 = arith.constant 0 : i32
    %c0_i32_1 = arith.constant 0 : i32
    return %c0_i32, %c0_i32_0 : i32, i32
  }
  func.func @transform_7(%arg0: i32, %arg1: memref<8xi32, #tpu.memory_space<smem>>) -> (i32, i32) {
    %c0_i32 = arith.constant 0 : i32
    %c0_i32_0 = arith.constant 0 : i32
    %c0_i32_1 = arith.constant 0 : i32
    return %c0_i32, %c0_i32_0 : i32, i32
  }
}

</mosaic_0001>

<bundles_post_ra>
// kernel: tpu_custom_call.1
= control target key start
LH: loop header
LB: loop body
LE: loop exit
PB: predicated region body
PF: predicated region fallthrough
CT: control target
= control target key end

     0   :  { %s2571_s0 = inlined_call_operand.hbm [shape: s32[8], index: 0, kind: input, shape index: {}]   ;;  %s2572_s1 = inlined_call_operand.hbm [shape: f32[8,128], index: 1, kind: input, shape index: {}]   ;;  %s2573_s2 = inlined_call_operand.hbm [shape: bf16[256,512], index: 2, kind: input, shape index: {}]   ;;  %s2574_s3 = inlined_call_operand.vmem [shape: f32[1,512], index: 3, kind: input, shape index: {}]   ;;  %s2575_s4 = inlined_call_operand.hbm [shape: bf16[128,512], index: 4, kind: input, shape index: {}]   ;;  %s2576_s5 = inlined_call_operand.vmem [shape: f32[1,512], index: 5, kind: input, shape index: {}]   ;;  %s2577_s6 = inlined_call_operand.hbm [shape: f32[512,128], index: 6, kind: input, shape index: {}]   ;;  %s2578_s7 = inlined_call_operand.hbm [shape: f32[8,512], index: 7, kind: output, shape index: {0}]   ;;  %s2579_s8 = inlined_call_operand.hbm [shape: f32[8,128], index: 8, kind: output, shape index: {1}]  }
   0x1   :  { %2584 = sst [smem:[#allocation51_spill]] %s2572_s1  ;;  %s1684_s29 = scalar_lea.hbm %s2571_s0, 16 }
   0x2   :  { %2585 = sst [smem:[#allocation52_spill]] %s2573_s2  ;;  %p1685_p0 = scmp.ne.s32.totalorder %s2571_s0, %s1684_s29 }
   0x3   :  { %2586 = sst [smem:[#allocation53_spill]] %s2575_s4  ;;  %p1688_p1 = scmp.lt.u32.totalorder %s1684_s29, %s2571_s0 }
   0x5   :  { %p1690_p2 = pnand %p1688_p1, %p1685_p0 }
   0x7   :  { %1693 = shalt.err (!%p1690_p2)  }
   0x8   :  { %s2094_s12 = smov [#allocation9]  }
   0x9   :  { %15 = dma.hbm_to_smem %s2571_s0, 16, %s2094_s12, [#allocation8] }
   0xa   :  { %2040 = dma.done.wait [#allocation8], 16 }
   0xb   :  { %2041 = vsyncadd [#allocation8], 4294967280 }
   0xc   :  { %17 = sfence }
   0xd   :  { %18 = vsyncpa [#allocation11], 0 }
   0xe   :  { %19 = vsyncpa [#allocation14], 0 }
   0xf   :  { %20 = vsyncpa [#allocation12], 0 }
  0x10   :  { %21 = vsyncpa [#allocation18], 0  ;;  %s2175_s15 = smov 0   ;;  %s2177_s16 = smov 0  }
  0x11   :  { %s2179_s17 = smov 0   ;;  %s2181_s18 = smov 0  }
  0x12 LB: > { %s2194_s0 = sadd.s32 4294967295, %s2092_s18   ;;  %s2197_s19 = sadd.s32 1, %s2092_s18   ;;  %s2092_s18 = sphi %s2181_s18, %s2607_s18   ;;  %s2088_s17 = sphi %s2179_s17, %s2606_s17   ;;  %s2084_s16 = sphi %s2177_s16, %s2605_s16   ;;  %s2080_s15 = sphi %s2175_s15, %s2604_s15  }
  0x13   : > { %s94_s20 = ssub.s32 %s2092_s18, %s2197_s19  ;;  %s97_s21 = sadd.s32 1, %s2088_s17 }
  0x14   : > { %p95_p3 = scmp.eq.s32.totalorder %s94_s20, 0  ;;  %p104_p4 = scmp.ne.s32.totalorder %s2088_s17, %s2084_s16 }
  0x15   : > { %p105_p5 = scmp.eq.s32.totalorder %s2092_s18, 0  ;;  %p110_p6 = scmp.ne.s32.totalorder %s2084_s16, %s2080_s15 }
  0x16   : > { %s2207_s22 = scalar_select %p95_p3, %s2088_s17, %s97_s21  }
  0x17   : > { %p2209_p7 = por %p105_p5, %p104_p4  ;;  %p2580_p8 = scmp.eq.s32.totalorder %s2194_s0, 0 }
  0x18   : > { %p1322_p9 = scmp.ge.s32.totalorder %s2092_s18, 1  ;;  %p189_p10 = scmp.lt.s32.totalorder %s2092_s18, 5 }
  0x19   : > { %p2218_p11 = por %p2580_p8, %p110_p6  ;;  %s2095_s26 = smov [#allocation10]  }
  0x1a   : > { %p2223_p13 = pnand %p1322_p9, %p189_p10  ;;  %s202_s27 = sshll.u32 %s2095_s26, 4  ;;  %s203_s27 = int_to_ptr.vmem [resolvable:$true] %s202_s27 }
  0x1b   : > { %s2588_s24 = scalar_select %p2218_p11, 1, 0 }
  0x1c   : > { %s2589_s25 = scalar_select %p2223_p13, 1, 0 }
  0x1d   : > { %p1487_p0 = pneg %p2223_p13  ;;  %p1500_p1 = scmp.lt.s32.totalorder %s2092_s18, 4 }
  0x1e   : > { %s2096_s29 = smov [#allocation13]   ;;  %s2592_s1 = sld [smem:[#allocation51_spill]] }
  0x1f   : > { %p2232_p2 = pnand %p1487_p0, %p2580_p8  ;;  %s212_s30 = sshll.u32 %s2096_s29, 4  ;;  %s2242_s30 = int_to_ptr.vmem [resolvable:$true] %s212_s30 }
  0x20   : > { %p2238_p3 = pnand %p1500_p1, %p2209_p7 }
  0x21   : > { %p1696_p5 = pneg %p2232_p2 }
  0x22   : > { %s2591_s9 = scalar_select %p2238_p3, 1, 0 }
  0x24   : > { %s1694_s12 = scalar_lea.hbm %s2592_s1, 128 }
  0x25   : > { %p1695_p4 = scmp.ne.s32.totalorder %s2592_s1, %s1694_s12  ;;  %p1701_p7 = scmp.lt.u32.totalorder %s1694_s12, %s2592_s1 }
  0x27   : > { %p1697_p6 = pnand %p1696_p5, %p1695_p4 }
  0x29   : > { %p1698_p9 = pneg %p1697_p6 }
  0x2b   : > { %p1703_p10 = pnand %p1701_p7, %p1698_p9 }
  0x2d   : > { %1706 = shalt.err (!%p1703_p10)
}
  0x2e   : > { %s1707_s21 = scalar_lea.vmem %s203_s27, 128  ;;  %p1715_p8 = scmp.lt.s32.totalorder %s203_s27, %s203_s27 }
  0x2f   : > { %p1708_p0 = scmp.ne.s32.totalorder %s203_s27, %s1707_s21  ;;  %p1716_p11 = scmp.lt.s32.totalorder %s1707_s21, %s1707_s21 }
  0x31   : > { %p1710_p1 = pnand %p1708_p0, %p1696_p5  ;;  %p1717_p13 = por %p1716_p11, %p1715_p8 }
  0x33   : > { %p1711_p12 = pneg %p1710_p1 }
  0x35   : > { %p1718_p3 = pnand %p1717_p13, %p1711_p12 }
  0x37   : > { %1721 = shalt.err (!%p1718_p3)
}
  0x38   : > { %1490 = dma.hbm_to_vmem [thread:$0]  (!%p2232_p2), %s2592_s1, 128, %s203_s27, [#allocation11]  }
  0x39   : > { %s2593_s2 = sld [smem:[#allocation52_spill]] }
  0x3f   : > { %s1722_s11 = scalar_lea.hbm %s2593_s2, 8192 }
  0x40   : > { %p1723_p4 = scmp.ne.s32.totalorder %s2593_s2, %s1722_s11  ;;  %p1729_p12 = scmp.lt.u32.totalorder %s1722_s11, %s2593_s2 }
  0x42   : > { %p1725_p8 = pnand %p1723_p4, %p1696_p5 }
  0x44   : > { %p1726_p11 = pneg %p1725_p8 }
  0x46   : > { %p1731_p13 = pnand %p1729_p12, %p1726_p11 }
  0x48   : > { %1734 = shalt.err (!%p1731_p13)
}
  0x49   : > { %s1735_s27 = scalar_lea.vmem %s2242_s30, 8192  ;;  %p1743_p7 = scmp.lt.s32.totalorder %s2242_s30, %s2242_s30 }
  0x4a   : > { %p1736_p3 = scmp.ne.s32.totalorder %s2242_s30, %s1735_s27  ;;  %p1744_p10 = scmp.lt.s32.totalorder %s1735_s27, %s1735_s27 }
  0x4c   : > { %p1738_p6 = pnand %p1736_p3, %p1696_p5  ;;  %p1745_p0 = por %p1744_p10, %p1743_p7 }
  0x4e   : > { %p1739_p9 = pneg %p1738_p6 }
  0x50   : > { %p1746_p1 = pnand %p1745_p0, %p1739_p9 }
  0x52   : > { %1749 = shalt.err (!%p1746_p1)
}
  0x53   : > { %s2097_s20 = smov 256   ;;  %s2098_s21 = smov 16  }
  0x54   : > { %1493 = dma.hbm_to_vmem [thread:$0]  (!%p2232_p2), %s2593_s2, 8192, %s2242_s30, [#allocation14], %s2097_s20, %s2097_s20, %s2098_s21  }
  0x55   : > { %s229_s29 = sand.u32 1, %s2092_s18   ;;  %s231_s10 = sand.u32 1, %s2088_s17  }
  0x56   : > { %s1326_s11 = sshll.u32 %s231_s10, 6  ;;  %s1327_s12 = sshll.u32 %s2092_s18, 6 }
  0x57   : > { %s2594_s4 = sld [smem:[#allocation53_spill]]  ;;  %s233_s28 = scalar_lea.vmem [#allocation15], %s1326_s11 }
  0x58   : > { %s239_s27 = sshll.u32 %s233_s28, 4  ;;  %s2303_s1 = scalar_lea.sflag [#allocation11], %s229_s29  ;;  %s2301_s27 = int_to_ptr.vmem [resolvable:$true] %s239_s27 }
  0x59   : > { %p2595_p5 = scmp.ne.s32.totalorder %s2591_s9, 0 }
  0x5b   : > { %p1752_p4 = pneg %p2595_p5 }
  0x5d   : > { %s2299_s15 = scalar_lea.hbm %s2594_s4, %s1327_s12  ;;  %s1755_s23 = scalar_lea.hbm %s2594_s4, 4096 }
  0x5e   : > { %s1750_s30 = scalar_lea.hbm %s2299_s15, 1024  ;;  %p1756_p12 = scmp.lt.u32.totalorder %s2299_s15, %s2594_s4 }
  0x5f   : > { %p1751_p2 = scmp.ne.s32.totalorder %s2299_s15, %s1750_s30  ;;  %p1757_p13 = scmp.lt.u32.totalorder %s1755_s23, %s1750_s30 }
  0x60   : > { %p1759_p6 = scmp.lt.u32.totalorder %s1750_s30, %s2299_s15 }
  0x61   : > { %p1753_p8 = pnand %p1752_p4, %p1751_p2  ;;  %p1758_p3 = por %p1757_p13, %p1756_p12 }
  0x63   : > { %p1754_p11 = pneg %p1753_p8  ;;  %p1760_p9 = por %p1759_p6, %p1758_p3 }
  0x65   : > { %p1761_p7 = pnand %p1760_p9, %p1754_p11 }
  0x67   : > { %1764 = shalt.err (!%p1761_p7)
}
  0x68   : > { %s1765_s29 = scalar_lea.vmem %s2301_s27, 1024  ;;  %s2099_s11 = smov [#allocation15]  }
  0x69   : > { %p1766_p10 = scmp.ne.s32.totalorder %s2301_s27, %s1765_s29  ;;  %s1770_s12 = sshll.u32 %s2099_s11, 4  ;;  %s1771_s12 = int_to_ptr.vmem [resolvable:$false] %s1770_s12 }
  0x6a   : > { %s1772_s13 = scalar_lea.vmem %s1771_s12, 2048  ;;  %p1773_p2 = scmp.lt.s32.totalorder %s2301_s27, %s1771_s12 }
  0x6b   : > { %p1768_p0 = pnand %p1766_p10, %p1752_p4  ;;  %p1774_p8 = scmp.lt.s32.totalorder %s1772_s13, %s1765_s29 }
  0x6d   : > { %p1769_p1 = pneg %p1768_p0  ;;  %p1775_p12 = por %p1774_p8, %p1773_p2 }
  0x6f   : > { %p1776_p13 = pnand %p1775_p12, %p1769_p1 }
  0x71   : > { %1779 = shalt.err (!%p1776_p13)
}
  0x72   : > { %s2100_s14 = smov 64   ;;  %s2101_s28 = smov 4  }
  0x73   : > { %1497 = dma.hbm_to_vmem [thread:$0]  (!%p2595_p5), %s2299_s15, 1024, %s2301_s27, %s2303_s1, %s2097_s20, %s2100_s14, %s2101_s28  }
  0x74   : > { %p2596_p4 = scmp.ne.s32.totalorder %s2589_s25, 0 }
  0x75   : > { %p2597_p11 = scmp.eq.s32.totalorder (!%p2596_p4), %s2194_s0, 0 }
  0x76   : > { %257 = sbr.rel (%p2596_p4) target bundleno = 1537 (0x601), region = 40 }
  0x7d   : > { %2043 = dma.done.wait (%p2597_p11), [#allocation11], 128   ;;  %p2598_p3 = pmov %p2597_p11 }
  0x7f   : > { %2045 = vsyncadd (%p2598_p3), [#allocation11], 4294967168  ;;  %p2599_p6 = pmov %p2598_p3 }
  0x80   : > { %p2600_p9 = pmov %p2598_p3 }
  0x81   : > { %2047 = dma.done.wait (%p2599_p6), [#allocation14], 8192  }
  0x82   : > { %2049 = vsyncadd (%p2600_p9), [#allocation14], 4294959104  ;;  %s267_s9 = sand.u32 1, %s2194_s0   ;;  %s269_s1 = sand.u32 1, %s2084_s16  }
  0x83   : > { %s1331_s20 = sshll.u32 %s269_s1, 6  ;;  %s268_s25 = scalar_lea.sflag [#allocation11], %s267_s9 }
  0x84   : > { %s2344_s15 = scalar_lea.vmem [#allocation15], %s1331_s20  ;;  %p2601_p5 = scmp.ne.s32.totalorder %s2588_s24, 0 }
  0x86   : > { %2051 = dma.done.wait (%p2601_p5), %s268_s25, 1024  }
  0x87   : > { %2053 = vsyncadd (%p2601_p5), %s268_s25, 4294966272  ;;  %p298_p7 = scmp.lt.s32.totalorder %s2194_s0, 3  ;;  %p2602_p10 = scmp.ne.s32.totalorder %s2194_s0, 0 }
  0x88   : > { %s306_s23 = sld [smem:[#allocation9]] (!%p2602_p10)  ;;  %s2102_s26 = smov (!%p2602_p10), [#allocation2]  }
  0x89   : > { %s2352_s27 = scalar_select %p298_p7, %s2194_s0, 3 }
  0x8a   : > { %305 = sbr.rel (%p2602_p10) target bundleno = 656 (0x290), region = 56  ;;  %s316_s10 = sshll.u32 (!%p2602_p10), %s2102_s26, 4  ;;  %s2362_s10 = int_to_ptr.vmem [resolvable:$true] %s316_s10 }
  0x8b   : > { %s2360_s29 = sld [smem:[#allocation9 + $0x1]] (!%p2602_p10)  ;;  %s2103_s24 = smov (!%p2602_p10), [#allocation2 + $0x1]  }
  0x8c   : > { %s332_s11 = sshll.u32 (!%p2602_p10), %s2103_s24, 4  ;;  %s2364_s12 = sld [smem:[#allocation9 + $0x2]] (!%p2602_p10)  ;;  %s2366_s11 = int_to_ptr.vmem [resolvable:$true] %s332_s11 }
  0x8d   : > { %s2104_s13 = smov (!%p2602_p10), [#allocation2 + $0x2]   ;;  %s2368_s28 = sld [smem:[#allocation9 + $0x3]] (!%p2602_p10) }
  0x8e   : > { %s348_s14 = sshll.u32 (!%p2602_p10), %s2104_s13, 4  ;;  %s1333_s9 = sshll.u32 (!%p2602_p10), %s306_s23, 4  ;;  %s2370_s14 = int_to_ptr.vmem [resolvable:$true] %s348_s14 }
  0x8f   : > { %s308_s25 = scalar_lea.hbm (!%p2602_p10), %s2577_s6, %s1333_s9  ;;  %s2379_s21 = scalar_lea.hbm (!%p2602_p10), %s2577_s6, 8192 }
  0x90   : > { %s1780_s18 = scalar_lea.hbm (!%p2602_p10), %s308_s25, 16  ;;  %p1783_p1 = scmp.lt.u32.totalorder (!%p2602_p10), %s308_s25, %s2577_s6 }
  0x91   : > { %s1335_s30 = sshll.u32 %s2360_s29, 4  ;;  %p1781_p0 = scmp.ne.s32.totalorder %s308_s25, %s1780_s18 }
  0x92   : > { %p1784_p2 = scmp.lt.u32.totalorder %s2379_s21, %s1780_s18  ;;  %p1786_p12 = scmp.lt.u32.totalorder %s1780_s18, %s308_s25 }
  0x94   : > { %p1785_p8 = por %p1784_p2, %p1783_p1 }
  0x96   : > { %p1787_p13 = por %p1786_p12, %p1785_p8 }
  0x98   : > { %p1788_p4 = pnand %p1787_p13, %p1781_p0 }
  0x9a   : > { %1791 = shalt.err (!%p1788_p4)  }
  0x9b   : > { %s1792_s23 = scalar_lea.vmem %s2362_s10, 16  ;;  %s2388_s29 = scalar_lea.vmem %s2362_s10, 128 }
  0x9c   : > { %p1793_p11 = scmp.ne.s32.totalorder %s2362_s10, %s1792_s23  ;;  %p1797_p3 = scmp.lt.s32.totalorder %s2362_s10, %s2362_s10 }
  0x9d   : > { %p1798_p6 = scmp.lt.s32.totalorder %s2388_s29, %s1792_s23 }
  0x9f   : > { %p1799_p9 = por %p1798_p6, %p1797_p3 }
  0xa1   : > { %p1800_p5 = pnand %p1799_p9, %p1793_p11 }
  0xa3   : > { %1803 = shalt.err (!%p1800_p5)  }
  0xa4   : > { %319 = dma.hbm_to_vmem [thread:$0]  %s308_s25, 16, %s2362_s10, [#allocation7] }
  0xa5   : > { %s322_s13 = scalar_lea.hbm %s2577_s6, %s1335_s30  ;;  %s1337_s9 = sshll.u32 %s2364_s12, 4 }
  0xa6   : > { %s1804_s1 = scalar_lea.hbm %s322_s13, 16  ;;  %p1807_p10 = scmp.lt.u32.totalorder %s322_s13, %s2577_s6 }
  0xa7   : > { %p1805_p7 = scmp.ne.s32.totalorder %s322_s13, %s1804_s1  ;;  %p1808_p0 = scmp.lt.u32.totalorder %s2379_s21, %s1804_s1 }
  0xa8   : > { %p1810_p2 = scmp.lt.u32.totalorder %s1804_s1, %s322_s13 }
  0xa9   : > { %p1809_p1 = por %p1808_p0, %p1807_p10 }
  0xab   : > { %p1811_p8 = por %p1810_p2, %p1809_p1 }
  0xad   : > { %p1812_p12 = pnand %p1811_p8, %p1805_p7 }
  0xaf   : > { %1815 = shalt.err (!%p1812_p12)  }
  0xb0   : > { %s1816_s25 = scalar_lea.vmem %s2366_s11, 16  ;;  %p1821_p4 = scmp.lt.s32.totalorder %s2366_s11, %s2362_s10 }
  0xb1   : > { %p1817_p13 = scmp.ne.s32.totalorder %s2366_s11, %s1816_s25  ;;  %p1822_p11 = scmp.lt.s32.totalorder %s2388_s29, %s1816_s25 }
  0xb3   : > { %p1823_p3 = por %p1822_p11, %p1821_p4 }
  0xb5   : > { %p1824_p6 = pnand %p1823_p3, %p1817_p13 }
  0xb7   : > { %1827 = shalt.err (!%p1824_p6)  }
  0xb8   : > { %335 = dma.hbm_to_vmem [thread:$0]  %s322_s13, 16, %s2366_s11, [#allocation7 + $0x1] }
  0xb9   : > { %s338_s26 = scalar_lea.hbm %s2577_s6, %s1337_s9  ;;  %s1339_s24 = sshll.u32 %s2368_s28, 4 }
  0xba   : > { %s1828_s23 = scalar_lea.hbm %s338_s26, 16  ;;  %p1831_p5 = scmp.lt.u32.totalorder %s338_s26, %s2577_s6 }
  0xbb   : > { %p1829_p9 = scmp.ne.s32.totalorder %s338_s26, %s1828_s23  ;;  %p1832_p7 = scmp.lt.u32.totalorder %s2379_s21, %s1828_s23 }
  0xbc   : > { %p1834_p0 = scmp.lt.u32.totalorder %s1828_s23, %s338_s26 }
  0xbd   : > { %p1833_p10 = por %p1832_p7, %p1831_p5 }
  0xbf   : > { %p1835_p1 = por %p1834_p0, %p1833_p10 }
  0xc1   : > { %p1836_p2 = pnand %p1835_p1, %p1829_p9 }
  0xc3   : > { %1839 = shalt.err (!%p1836_p2)  }
  0xc4   : > { %s1840_s11 = scalar_lea.vmem %s2370_s14, 16  ;;  %p1845_p12 = scmp.lt.s32.totalorder %s2370_s14, %s2362_s10 }
  0xc5   : > { %p1841_p8 = scmp.ne.s32.totalorder %s2370_s14, %s1840_s11  ;;  %p1846_p13 = scmp.lt.s32.totalorder %s2388_s29, %s1840_s11 }
  0xc7   : > { %p1847_p4 = por %p1846_p13, %p1845_p12 }
  0xc9   : > { %p1848_p11 = pnand %p1847_p4, %p1841_p8 }
  0xcb   : > { %1851 = shalt.err (!%p1848_p11)  }
  0xcc   : > { %351 = dma.hbm_to_vmem [thread:$0]  %s338_s26, 16, %s2370_s14, [#allocation7 + $0x2] }
  0xcd   : > { %s354_s9 = scalar_lea.hbm %s2577_s6, %s1339_s24  ;;  %s2105_s1 = smov [#allocation2 + $0x3]  }
  0xce   : > { %s364_s20 = sshll.u32 %s2105_s1, 4  ;;  %s2425_s18 = sld [smem:[#allocation9 + $0x4]]  ;;  %s365_s20 = int_to_ptr.vmem [resolvable:$true] %s364_s20 }
  0xcf   : > { %s1852_s25 = scalar_lea.hbm %s354_s9, 16  ;;  %p1855_p6 = scmp.lt.u32.totalorder %s354_s9, %s2577_s6 }
  0xd0   : > { %p1853_p3 = scmp.ne.s32.totalorder %s354_s9, %s1852_s25  ;;  %p1856_p9 = scmp.lt.u32.totalorder %s2379_s21, %s1852_s25 }
  0xd1   : > { %p1858_p7 = scmp.lt.u32.totalorder %s1852_s25, %s354_s9 }
  0xd2   : > { %p1857_p5 = por %p1856_p9, %p1855_p6 }
  0xd4   : > { %p1859_p10 = por %p1858_p7, %p1857_p5 }
  0xd6   : > { %p1860_p0 = pnand %p1859_p10, %p1853_p3 }
  0xd8   : > { %1863 = shalt.err (!%p1860_p0)  }
  0xd9   : > { %s1864_s14 = scalar_lea.vmem %s365_s20, 16  ;;  %p1869_p2 = scmp.lt.s32.totalorder %s365_s20, %s2362_s10 }
  0xda   : > { %p1865_p1 = scmp.ne.s32.totalorder %s365_s20, %s1864_s14  ;;  %p1870_p8 = scmp.lt.s32.totalorder %s2388_s29, %s1864_s14 }
  0xdc   : > { %p1871_p12 = por %p1870_p8, %p1869_p2 }
  0xde   : > { %p1872_p13 = pnand %p1871_p12, %p1865_p1 }
  0xe0   : > { %1875 = shalt.err (!%p1872_p13)  }
  0xe1   : > { %367 = dma.hbm_to_vmem [thread:$0]  %s354_s9, 16, %s365_s20, [#allocation7 + $0x3] }
  0xe2   : > { %s2106_s26 = smov [#allocation2 + $0x4]   ;;  %s2433_s23 = sld [smem:[#allocation9 + $0x5]] }
  0xe3   : > { %s380_s24 = sshll.u32 %s2106_s26, 4  ;;  %s2107_s2 = smov [#allocation2 + $0x5]   ;;  %s381_s24 = int_to_ptr.vmem [resolvable:$true] %s380_s24 }
  0xe4   : > { %s396_s4 = sshll.u32 %s2107_s2, 4  ;;  %s2435_s11 = sld [smem:[#allocation9 + $0x6]]  ;;  %s2438_s4 = int_to_ptr.vmem [resolvable:$true] %s396_s4 }
  0xe5   : > { %s1341_s28 = sshll.u32 %s2425_s18, 4 }
  0xe6   : > { %s370_s25 = scalar_lea.hbm %s2577_s6, %s1341_s28 }
  0xe7   : > { %s1876_s12 = scalar_lea.hbm %s370_s25, 16  ;;  %p1879_p11 = scmp.lt.u32.totalorder %s370_s25, %s2577_s6 }
  0xe8   : > { %p1877_p4 = scmp.ne.s32.totalorder %s370_s25, %s1876_s12  ;;  %p1880_p3 = scmp.lt.u32.totalorder %s2379_s21, %s1876_s12 }
  0xe9   : > { %p1882_p9 = scmp.lt.u32.totalorder %s1876_s12, %s370_s25 }
  0xea   : > { %p1881_p6 = por %p1880_p3, %p1879_p11 }
  0xec   : > { %p1883_p5 = por %p1882_p9, %p1881_p6 }
  0xee   : > { %p1884_p7 = pnand %p1883_p5, %p1877_p4 }
  0xf0   : > { %1887 = shalt.err (!%p1884_p7)  }
  0xf1   : > { %s1888_s30 = scalar_lea.vmem %s381_s24, 16  ;;  %p1893_p0 = scmp.lt.s32.totalorder %s381_s24, %s2362_s10 }
  0xf2   : > { %p1889_p10 = scmp.ne.s32.totalorder %s381_s24, %s1888_s30  ;;  %p1894_p1 = scmp.lt.s32.totalorder %s2388_s29, %s1888_s30 }
  0xf4   : > { %p1895_p2 = por %p1894_p1, %p1893_p0 }
  0xf6   : > { %p1896_p8 = pnand %p1895_p2, %p1889_p10 }
  0xf8   : > { %1899 = shalt.err (!%p1896_p8)  }
  0xf9   : > { %383 = dma.hbm_to_vmem [thread:$0]  %s370_s25, 16, %s381_s24, [#allocation7 + $0x4] }
  0xfa   : > { %s1343_s18 = sshll.u32 %s2433_s23, 4  ;;  %s2108_s14 = smov [#allocation2 + $0x6]  }
  0xfb   : > { %s412_s26 = sshll.u32 %s2108_s14, 4  ;;  %s386_s13 = scalar_lea.hbm %s2577_s6, %s1343_s18  ;;  %s2453_s26 = int_to_ptr.vmem [resolvable:$true] %s412_s26 }
  0xfc   : > { %s1900_s1 = scalar_lea.hbm %s386_s13, 16  ;;  %p1903_p13 = scmp.lt.u32.totalorder %s386_s13, %s2577_s6 }
  0xfd   : > { %p1901_p12 = scmp.ne.s32.totalorder %s386_s13, %s1900_s1  ;;  %p1904_p4 = scmp.lt.u32.totalorder %s2379_s21, %s1900_s1 }
  0xfe   : > { %p1906_p3 = scmp.lt.u32.totalorder %s1900_s1, %s386_s13 }
  0xff   : > { %p1905_p11 = por %p1904_p4, %p1903_p13 }
 0x101   : > { %p1907_p6 = por %p1906_p3, %p1905_p11 }
 0x103   : > { %p1908_p9 = pnand %p1907_p6, %p1901_p12 }
 0x105   : > { %1911 = shalt.err (!%p1908_p9)  }
 0x106   : > { %s1912_s24 = scalar_lea.vmem %s2438_s4, 16  ;;  %p1917_p7 = scmp.lt.s32.totalorder %s2438_s4, %s2362_s10 }
 0x107   : > { %p1913_p5 = scmp.ne.s32.totalorder %s2438_s4, %s1912_s24  ;;  %p1918_p10 = scmp.lt.s32.totalorder %s2388_s29, %s1912_s24 }
 0x109   : > { %p1919_p0 = por %p1918_p10, %p1917_p7 }
 0x10b   : > { %p1920_p1 = pnand %p1919_p0, %p1913_p5 }
 0x10d   : > { %1923 = shalt.err (!%p1920_p1)  }
 0x10e   : > { %399 = dma.hbm_to_vmem [thread:$0]  %s386_s13, 16, %s2438_s4, [#allocation7 + $0x5] }
 0x10f   : > { %s1345_s23 = sshll.u32 %s2435_s11, 4  ;;  %s1346_s25 = sld [smem:[#allocation9 + $0x7]] }
 0x110   : > { %s402_s18 = scalar_lea.hbm %s2577_s6, %s1345_s23 }
 0x111   : > { %s1924_s14 = scalar_lea.hbm %s402_s18, 16  ;;  %p1927_p8 = scmp.lt.u32.totalorder %s402_s18, %s2577_s6 }
 0x112   : > { %p1925_p2 = scmp.ne.s32.totalorder %s402_s18, %s1924_s14  ;;  %p1928_p12 = scmp.lt.u32.totalorder %s2379_s21, %s1924_s14 }
 0x113   : > { %p1930_p4 = scmp.lt.u32.totalorder %s1924_s14, %s402_s18 }
 0x114   : > { %p1929_p13 = por %p1928_p12, %p1927_p8 }
 0x116   : > { %p1931_p11 = por %p1930_p4, %p1929_p13 }
 0x118   : > { %p1932_p3 = pnand %p1931_p11, %p1925_p2 }
 0x11a   : > { %1935 = shalt.err (!%p1932_p3)  }
 0x11b   : > { %s1936_s4 = scalar_lea.vmem %s2453_s26, 16  ;;  %p1941_p9 = scmp.lt.s32.totalorder %s2453_s26, %s2362_s10 }
 0x11c   : > { %p1937_p6 = scmp.ne.s32.totalorder %s2453_s26, %s1936_s4  ;;  %p1942_p5 = scmp.lt.s32.totalorder %s2388_s29, %s1936_s4 }
 0x11e   : > { %p1943_p7 = por %p1942_p5, %p1941_p9 }
 0x120   : > { %p1944_p10 = pnand %p1943_p7, %p1937_p6 }
 0x122   : > { %1947 = shalt.err (!%p1944_p10)  }
 0x123   : > { %415 = dma.hbm_to_vmem [thread:$0]  %s402_s18, 16, %s2453_s26, [#allocation7 + $0x6] }
 0x124   : > { %s2109_s11 = smov [#allocation2 + $0x7]   ;;  %s1347_s1 = sshll.u32 %s1346_s25, 4 }
 0x125   : > { %s428_s13 = sshll.u32 %s2109_s11, 4  ;;  %s418_s24 = scalar_lea.hbm %s2577_s6, %s1347_s1  ;;  %s429_s13 = int_to_ptr.vmem [resolvable:$true] %s428_s13 }
 0x126   : > { %s1948_s23 = scalar_lea.hbm %s418_s24, 16  ;;  %p1951_p1 = scmp.lt.u32.totalorder %s418_s24, %s2577_s6 }
 0x127   : > { %p1949_p0 = scmp.ne.s32.totalorder %s418_s24, %s1948_s23  ;;  %p1952_p2 = scmp.lt.u32.totalorder %s2379_s21, %s1948_s23 }
 0x128   : > { %p1954_p12 = scmp.lt.u32.totalorder %s1948_s23, %s418_s24 }
 0x129   : > { %p1953_p8 = por %p1952_p2, %p1951_p1 }
 0x12b   : > { %p1955_p13 = por %p1954_p12, %p1953_p8 }
 0x12d   : > { %p1956_p4 = pnand %p1955_p13, %p1949_p0 }
 0x12f   : > { %1959 = shalt.err (!%p1956_p4)  }
 0x130   : > { %s1960_s26 = scalar_lea.vmem %s429_s13, 16  ;;  %p1965_p3 = scmp.lt.s32.totalorder %s429_s13, %s2362_s10 }
 0x131   : > { %p1961_p11 = scmp.ne.s32.totalorder %s429_s13, %s1960_s26  ;;  %p1966_p6 = scmp.lt.s32.totalorder %s2388_s29, %s1960_s26 }
 0x133   : > { %p1967_p9 = por %p1966_p6, %p1965_p3 }
 0x135   : > { %p1968_p5 = pnand %p1967_p9, %p1961_p11 }
 0x137   : > { %1971 = shalt.err (!%p1968_p5)  }
 0x138   : > { %431 = dma.hbm_to_vmem [thread:$0]  %s418_s24, 16, %s429_s13, [#allocation7 + $0x7] }
 0x139   : > { %2054 = dma.done.wait [#allocation7], 16 }
 0x13a   : > { %2055 = vsyncadd [#allocation7], 4294967280 }
 0x13b   : > { %2056 = dma.done.wait [#allocation7 + $0x1], 16 }
 0x13c   : > { %2057 = vsyncadd [#allocation7 + $0x1], 4294967280 }
 0x13d   : > { %2058 = dma.done.wait [#allocation7 + $0x2], 16 }
 0x13e   : > { %2059 = vsyncadd [#allocation7 + $0x2], 4294967280 }
 0x13f   : > { %2060 = dma.done.wait [#allocation7 + $0x3], 16 }
 0x140   : > { %2061 = vsyncadd [#allocation7 + $0x3], 4294967280 }
 0x141   : > { %2062 = dma.done.wait [#allocation7 + $0x4], 16 }
 0x142   : > { %2063 = vsyncadd [#allocation7 + $0x4], 4294967280 }
 0x143   : > { %2064 = dma.done.wait [#allocation7 + $0x5], 16 }
 0x144   : > { %2065 = vsyncadd [#allocation7 + $0x5], 4294967280 }
 0x145   : > { %2066 = dma.done.wait [#allocation7 + $0x6], 16 }
 0x146   : > { %2067 = vsyncadd [#allocation7 + $0x6], 4294967280 }
 0x147   : > { %2068 = dma.done.wait [#allocation7 + $0x7], 16 }
 0x148   : > { %2069 = vsyncadd [#allocation7 + $0x7], 4294967280  ;;  %vm971_vm0 = vcmask 7168   ;;  %v2110_v0 = vmov -inf   ;;  %v2111_v1 = vmov 0.0   ;;  %v2488_v38 = vld [vmem:[#allocation10] sm:$0xff] }
 0x149   : > { %972 = vst.msk [vmem:[#allocation4] sm:$0xff] %vm971_vm0, %v2110_v0  ;;  %973 = vst.msk [vmem:[#allocation5] sm:$0xff] %vm971_vm0, %v2111_v1  ;;  %v1562_v2 = vld [vmem:[#allocation13 + $0x4] ss:$16 sps:$4 sm:$0xff]   ;;  %v1564_v3 = vld [vmem:[#allocation13] ss:$16 sps:$4 sm:$0xff]   ;;  %v460_v41 = vpack.c.bf16 %v2488_v38, %v2488_v38 }
 0x14a   : > { %867 = vmatprep.subr.bf16.mxu0 %v1562_v2  ;;  %v1565_v4 = vld [vmem:[#allocation13 + $0x24] ss:$16 sps:$4 sm:$0xff]   ;;  %v1567_v5 = vld [vmem:[#allocation13 + $0x20] ss:$16 sps:$4 sm:$0xff]   ;;  %v1580_v9 = vld [vmem:[#allocation13 + $0xc] ss:$16 sps:$4 sm:$0xff]  }
 0x14b   : > { %868 = vmatpush1.bf16.msra.mxu0 %v1564_v3  ;;  %v1568_v6 = vld [vmem:[#allocation13 + $0x44] ss:$16 sps:$4 sm:$0xff]   ;;  %v1570_v7 = vld [vmem:[#allocation13 + $0x40] ss:$16 sps:$4 sm:$0xff]   ;;  %v1582_v10 = vld [vmem:[#allocation13 + $0x8] ss:$16 sps:$4 sm:$0xff]   ;;  %908 = vmatprep.subr.bf16.mxu1 %v1580_v9 }
 0x14c   : > { %869 = vmatprep.subr.bf16.mxu0 %v1565_v4  ;;  %v1571_v8 = vld [vmem:[#allocation13 + $0x64] ss:$16 sps:$4 sm:$0xff]   ;;  %v1573_v11 = vld [vmem:[#allocation13 + $0x60] ss:$16 sps:$4 sm:$0xff]   ;;  %909 = vmatpush1.bf16.msra.mxu1 %v1582_v10  ;;  %v1586_v12 = vld [vmem:[#allocation13 + $0x2c] ss:$16 sps:$4 sm:$0xff]  }
 0x14d   : > { %v1588_v13 = vld [vmem:[#allocation13 + $0x28] ss:$16 sps:$4 sm:$0xff]   ;;  %v1574_v14 = vld [vmem:[#allocation13 + $0x84] ss:$16 sps:$4 sm:$0xff]   ;;  %910 = vmatprep.subr.bf16.mxu1 %v1586_v12  ;;  %v1576_v15 = vld [vmem:[#allocation13 + $0x80] ss:$16 sps:$4 sm:$0xff]   ;;  %899 = vmatprep.mubr.bf16.mxu0 %v460_v41 }
 0x14e   : > { %v1592_v16 = vld [vmem:[#allocation13 + $0x4c] ss:$16 sps:$4 sm:$0xff]   ;;  %v1577_v17 = vld [vmem:[#allocation13 + $0xa4] ss:$16 sps:$4 sm:$0xff]   ;;  %v1594_v18 = vld [vmem:[#allocation13 + $0x48] ss:$16 sps:$4 sm:$0xff]   ;;  %940 = vmatprep.mubr.bf16.mxu1 %v460_v41 }
 0x14f   : > { %870 = vmatpush1.bf16.msra.mxu0 %v1567_v5  ;;  %v1598_v19 = vld [vmem:[#allocation13 + $0x6c] ss:$16 sps:$4 sm:$0xff]   ;;  %v1579_v20 = vld [vmem:[#allocation13 + $0xa0] ss:$16 sps:$4 sm:$0xff]   ;;  %v1583_v21 = vld [vmem:[#allocation13 + $0xc4] ss:$16 sps:$4 sm:$0xff]  }
 0x150   : > { %871 = vmatprep.subr.bf16.mxu0 %v1568_v6  ;;  %911 = vmatpush1.bf16.msra.mxu1 %v1588_v13  ;;  %v1600_v22 = vld [vmem:[#allocation13 + $0x68] ss:$16 sps:$4 sm:$0xff]   ;;  %v1604_v23 = vld [vmem:[#allocation13 + $0x8c] ss:$16 sps:$4 sm:$0xff]   ;;  %v1585_v24 = vld [vmem:[#allocation13 + $0xc0] ss:$16 sps:$4 sm:$0xff]   ;;  %v527_v6 = vlaneseq }
 0x151   : > { %912 = vmatprep.subr.bf16.mxu1 %v1592_v16  ;;  %v1589_v25 = vld [vmem:[#allocation13 + $0xe4] ss:$16 sps:$4 sm:$0xff]   ;;  %v1606_v26 = vld [vmem:[#allocation13 + $0x88] ss:$16 sps:$4 sm:$0xff]   ;;  %v1610_v27 = vld [vmem:[#allocation13 + $0xac] ss:$16 sps:$4 sm:$0xff]  }
 0x152   : > { %v1591_v28 = vld [vmem:[#allocation13 + $0xe0] ss:$16 sps:$4 sm:$0xff]   ;;  %v1595_v29 = vld [vmem:[#allocation13 + $0x104] ss:$16 sps:$4 sm:$0xff]   ;;  %v1612_v30 = vld [vmem:[#allocation13 + $0xa8] ss:$16 sps:$4 sm:$0xff]  }
 0x153   : > { %872 = vmatpush1.bf16.msra.mxu0 %v1570_v7  ;;  %v1616_v31 = vld [vmem:[#allocation13 + $0xcc] ss:$16 sps:$4 sm:$0xff]   ;;  %v1597_v32 = vld [vmem:[#allocation13 + $0x100] ss:$16 sps:$4 sm:$0xff]   ;;  %v1601_v33 = vld [vmem:[#allocation13 + $0x124] ss:$16 sps:$4 sm:$0xff]  }
 0x154   : > { %873 = vmatprep.subr.bf16.mxu0 %v1571_v8  ;;  %913 = vmatpush1.bf16.msra.mxu1 %v1594_v18  ;;  %v1618_v34 = vld [vmem:[#allocation13 + $0xc8] ss:$16 sps:$4 sm:$0xff]   ;;  %v1622_v35 = vld [vmem:[#allocation13 + $0xec] ss:$16 sps:$4 sm:$0xff]   ;;  %v1603_v36 = vld [vmem:[#allocation13 + $0x120] ss:$16 sps:$4 sm:$0xff]  }
 0x155   : > { %914 = vmatprep.subr.bf16.mxu1 %v1598_v19  ;;  %v1624_v37 = vld [vmem:[#allocation13 + $0xe8] ss:$16 sps:$4 sm:$0xff]   ;;  %v1607_v39 = vld [vmem:[#allocation13 + $0x144] ss:$16 sps:$4 sm:$0xff]   ;;  %v1628_v40 = vld [vmem:[#allocation13 + $0x10c] ss:$16 sps:$4 sm:$0xff]  }
 0x156   : > { %v1609_v42 = vld [vmem:[#allocation13 + $0x140] ss:$16 sps:$4 sm:$0xff]   ;;  %v1630_v43 = vld [vmem:[#allocation13 + $0x108] ss:$16 sps:$4 sm:$0xff]   ;;  %v1613_v44 = vld [vmem:[#allocation13 + $0x164] ss:$16 sps:$4 sm:$0xff]  }
 0x157   : > { %874 = vmatpush1.bf16.msra.mxu0 %v1573_v11  ;;  %v1634_v45 = vld [vmem:[#allocation13 + $0x12c] ss:$16 sps:$4 sm:$0xff]   ;;  %v1615_v46 = vld [vmem:[#allocation13 + $0x160] ss:$16 sps:$4 sm:$0xff]   ;;  %v1636_v47 = vld [vmem:[#allocation13 + $0x128] ss:$16 sps:$4 sm:$0xff]  }
 0x158   : > { %875 = vmatprep.subr.bf16.mxu0 %v1574_v14  ;;  %915 = vmatpush1.bf16.msra.mxu1 %v1600_v22  ;;  %v1619_v48 = vld [vmem:[#allocation13 + $0x184] ss:$16 sps:$4 sm:$0xff]   ;;  %v1640_v49 = vld [vmem:[#allocation13 + $0x14c] ss:$16 sps:$4 sm:$0xff]   ;;  %v1621_v50 = vld [vmem:[#allocation13 + $0x180] ss:$16 sps:$4 sm:$0xff]  }
 0x159   : > { %916 = vmatprep.subr.bf16.mxu1 %v1604_v23  ;;  %v1642_v51 = vld [vmem:[#allocation13 + $0x148] ss:$16 sps:$4 sm:$0xff]   ;;  %v1625_v52 = vld [vmem:[#allocation13 + $0x1a4] ss:$16 sps:$4 sm:$0xff]   ;;  %v1643_v53 = vld [vmem:[#allocation13 + $0x16c] ss:$16 sps:$4 sm:$0xff]  }
 0x15a   : > { %v1627_v54 = vld [vmem:[#allocation13 + $0x1a0] ss:$16 sps:$4 sm:$0xff]   ;;  %v1645_v55 = vld [vmem:[#allocation13 + $0x168] ss:$16 sps:$4 sm:$0xff]   ;;  %v1631_v56 = vld [vmem:[#allocation13 + $0x1c4] ss:$16 sps:$4 sm:$0xff]  }
 0x15b   : > { %876 = vmatpush1.bf16.msra.mxu0 %v1576_v15  ;;  %v1646_v57 = vld [vmem:[#allocation13 + $0x18c] ss:$16 sps:$4 sm:$0xff]   ;;  %v1633_v58 = vld [vmem:[#allocation13 + $0x1c0] ss:$16 sps:$4 sm:$0xff]   ;;  %v1648_v59 = vld [vmem:[#allocation13 + $0x188] ss:$16 sps:$4 sm:$0xff]  }
 0x15c   : > { %877 = vmatprep.subr.bf16.mxu0 %v1577_v17  ;;  %917 = vmatpush1.bf16.msra.mxu1 %v1606_v26  ;;  %v1637_v60 = vld [vmem:[#allocation13 + $0x1e4] ss:$16 sps:$4 sm:$0xff]   ;;  %v1649_v61 = vld [vmem:[#allocation13 + $0x1ac] ss:$16 sps:$4 sm:$0xff]   ;;  %v1639_v62 = vld [vmem:[#allocation13 + $0x1e0] ss:$16 sps:$4 sm:$0xff]  }
 0x15d   : > { %918 = vmatprep.subr.bf16.mxu1 %v1610_v27  ;;  %v458_v63 = vld [vmem:[#allocation2] sm:$0xff]  ;;  %v1651_v0 = vld [vmem:[#allocation13 + $0x1a8] ss:$16 sps:$4 sm:$0xff]   ;;  %v528_v7 = vshrl.u32 %v527_v6, 7  ;;  %v525_v9 = vld [vmem:[%s2574_s3] sm:$0xf] }
 0x15e   : > { %v1652_v1 = vld [vmem:[#allocation13 + $0x1cc] ss:$16 sps:$4 sm:$0xff]   ;;  %v459_v2 = vpack.c.bf16 %v458_v63, %v458_v63  ;;  %v1654_v3 = vld [vmem:[#allocation13 + $0x1c8] ss:$16 sps:$4 sm:$0xff]  }
 0x15f   : > { %878 = vmatpush1.bf16.msra.mxu0 %v1579_v20  ;;  %v1655_v4 = vld [vmem:[#allocation13 + $0x1ec] ss:$16 sps:$4 sm:$0xff]   ;;  %v1657_v5 = vld [vmem:[#allocation13 + $0x1e8] ss:$16 sps:$4 sm:$0xff]   ;;  %v529_v8 = vsub.s32 0, %v528_v7  ;;  %v533_v10 = vsub.s32 1, %v528_v7 }
 0x160   : > { %879 = vmatprep.subr.bf16.mxu0 %v1583_v21  ;;  %919 = vmatpush1.bf16.msra.mxu1 %v1612_v30  ;;  %v541_v27 = vsub.s32 3, %v528_v7 }
 0x161   : > { %920 = vmatprep.subr.bf16.mxu1 %v1616_v31  ;;  %v530_v11 = vrot.slane %v525_v9, %v529_v8  ;;  %v534_v13 = vrot.slane %v525_v9, %v533_v10 }
 0x163   : > { %880 = vmatpush1.bf16.msra.mxu0 %v1585_v24 }
 0x164   : > { %881 = vmatprep.subr.bf16.mxu0 %v1589_v25  ;;  %921 = vmatpush1.bf16.msra.mxu1 %v1618_v34 }
 0x165   : > { %922 = vmatprep.subr.bf16.mxu1 %v1622_v35 }
 0x167   : > { %882 = vmatpush1.bf16.msra.mxu0 %v1591_v28  ;;  %v537_v28 = vsub.s32 2, %v528_v7 }
 0x168   : > { %883 = vmatprep.subr.bf16.mxu0 %v1595_v29  ;;  %923 = vmatpush1.bf16.msra.mxu1 %v1624_v37  ;;  %v542_v29 = vrot.slane %v525_v9, %v541_v27 }
 0x169   : > { %924 = vmatprep.subr.bf16.mxu1 %v1628_v40 }
 0x16b   : > { %884 = vmatpush1.bf16.msra.mxu0 %v1597_v32  ;;  %v538_v32 = vrot.slane %v525_v9, %v537_v28 }
 0x16c   : > { %885 = vmatprep.subr.bf16.mxu0 %v1601_v33  ;;  %925 = vmatpush1.bf16.msra.mxu1 %v1630_v43 }
 0x16d   : > { %926 = vmatprep.subr.bf16.mxu1 %v1634_v45 }
 0x16f   : > { %886 = vmatpush1.bf16.msra.mxu0 %v1603_v36 }
 0x170   : > { %887 = vmatprep.subr.bf16.mxu0 %v1607_v39  ;;  %927 = vmatpush1.bf16.msra.mxu1 %v1636_v47 }
 0x171   : > { %928 = vmatprep.subr.bf16.mxu1 %v1640_v49 }
 0x173   : > { %888 = vmatpush1.bf16.msra.mxu0 %v1609_v42 }
 0x174   : > { %889 = vmatprep.subr.bf16.mxu0 %v1613_v44  ;;  %929 = vmatpush1.bf16.msra.mxu1 %v1642_v51 }
 0x175   : > { %930 = vmatprep.subr.bf16.mxu1 %v1643_v53 }
 0x177   : > { %890 = vmatpush1.bf16.msra.mxu0 %v1615_v46 }
 0x178   : > { %891 = vmatprep.subr.bf16.mxu0 %v1619_v48  ;;  %931 = vmatpush1.bf16.msra.mxu1 %v1645_v55 }
 0x179   : > { %932 = vmatprep.subr.bf16.mxu1 %v1646_v57 }
 0x17b   : > { %892 = vmatpush1.bf16.msra.mxu0 %v1621_v50 }
 0x17c   : > { %893 = vmatprep.subr.bf16.mxu0 %v1625_v52  ;;  %933 = vmatpush1.bf16.msra.mxu1 %v1648_v59 }
 0x17d   : > { %934 = vmatprep.subr.bf16.mxu1 %v1649_v61 }
 0x17f   : > { %894 = vmatpush1.bf16.msra.mxu0 %v1627_v54 }
 0x180   : > { %895 = vmatprep.subr.bf16.mxu0 %v1631_v56  ;;  %935 = vmatpush1.bf16.msra.mxu1 %v1651_v0 }
 0x181   : > { %936 = vmatprep.subr.bf16.mxu1 %v1652_v1 }
 0x183   : > { %896 = vmatpush1.bf16.msra.mxu0 %v1633_v58 }
 0x184   : > { %897 = vmatprep.subr.bf16.mxu0 %v1637_v60  ;;  %937 = vmatpush1.bf16.msra.mxu1 %v1654_v3 }
 0x185   : > { %938 = vmatprep.subr.bf16.mxu1 %v1655_v4 }
 0x187   : > { %898 = vmatpush1.bf16.msra.mxu0 %v1639_v62 }
 0x188   : > { %939 = vmatpush1.bf16.msra.mxu1 %v1657_v5 }
 0x18a   : > { %900 = vmatmul.mubr.bf16.vlgmr.msra.gmra.mrb[0].mxu0 %v459_v2 }
 0x18b   : > { %941 = vmatmul.mubr.bf16.vlgmr.msra.gmra.mrb[0].mxu1 %v459_v2 }
 0x25d   : > { %v901_v12 = vpop.f32.mrb[0].mxu0 }
 0x25e   : > { %v902_v14 = vadd.f32 %v901_v12, %v530_v11  ;;  %v903_v15 = vpop.f32.mrb[1].mxu0  ;;  %v942_v21 = vpop.f32.mrb[0].mxu1 }
 0x25f   : > { %v905_v16 = vpop.f32.mrb[2].mxu0  ;;  %v904_v19 = vadd.f32 %v903_v15, %v534_v13  ;;  %v944_v22 = vpop.f32.mrb[1].mxu1  ;;  %v943_v35 = vadd.f32 %v942_v21, %v538_v32 }
 0x260   : > { %v1412_v17 = vmul.f32 -1.442695, %v902_v14  ;;  %v906_v18 = vpop.f32.mrb[3].mxu0  ;;  %v946_v23 = vpop.f32.mrb[2].mxu1  ;;  %v945_v33 = vadd.f32 %v944_v22, %v542_v29 }
 0x261   : > { %v1413_v20 = vmul.f32 -1.442695, %v904_v19  ;;  %v947_v24 = vpop.f32.mrb[3].mxu1 }
 0x262   : > { %1658 = vpow2.f32 %v1412_v17 }
 0x263   : > { %1660 = vpow2.f32 %v1413_v20 }
 0x26c   : > { %v1659_v25 = vpop.eup %1658 }
 0x26d   : > { %v952_v26 = vadd.f32 1.0, %v1659_v25  ;;  %v1661_v30 = vpop.eup %1660 }
 0x26e   : > { %v958_v31 = vadd.f32 1.0, %v1661_v30 }
 0x26f   : > { %1662 = vrcp.f32 %v952_v26 }
 0x270   : > { %1664 = vrcp.f32 %v958_v31 }
 0x279   : > { %v1663_v34 = vpop.eup %1662 }
 0x27a   : > { %v961_v36 = vmul.f32 %v1663_v34, %v945_v33  ;;  %v1665_v39 = vpop.eup %1664 }
 0x27b   : > { %v964_v40 = vsub.f32 1.0, %v1665_v39  ;;  %v966_v42 = vmul.f32 %v1665_v39, %v2488_v38 }
 0x27c   : > { %v962_v37 = vadd.f32 %v961_v36, %v943_v35 }
 0x27e   : > { %1666 = vtanh.f32 %v962_v37 }
 0x288   : > { %v1667_v41 = vpop.eup %1666 }
 0x289   : > { %v965_v43 = vmul.f32 %v1667_v41, %v964_v40 }
 0x28b   : > { %v967_v44 = vadd.f32 %v966_v42, %v965_v43 }
 0x28d   : > { %968 = vst [vmem:[#allocation17] sm:$0xff] %v967_v44  ;;  %v969_v45 = vpack.c.bf16 %v967_v44, %v967_v44 }
 0x28f   : > { %970 = vst [vmem:[#allocation3] sm:$0xf] %v969_v45 }
 0x290 PF: > { %v1669_v46 = vld [vmem:[%s2344_s15] sm:$0xff]   ;;  %v2112_v47 = vmov 0.0   ;;  %v1670_v48 = vld [vmem:[%s2344_s15 + $0x8] sm:$0xff]   ;;  %vm2113_vm1 = vmmov 0   ;;  %v1671_v38 = vld [vmem:[%s2344_s15 + $0x10] sm:$0xff]   ;;  %s1423_s29 = sshll.u32 %s2194_s0, 7  ;;  %s2603_s28 = scalar_lea.vmem %s2576_s5, %s2352_s27 }
 0x291   : > { %1449 = vmatprep.subr.bf16.mxu0 %v2112_v47  ;;  %1465 = vmatprep.mubr.msk.bf16.mxu0 %vm2113_vm1, %v2112_v47  ;;  %v1672_v49 = vld [vmem:[%s2344_s15 + $0x18] sm:$0xff]   ;;  %v1673_v50 = vld [vmem:[%s2344_s15 + $0x20] sm:$0xff]   ;;  %v1674_v51 = vld [vmem:[%s2344_s15 + $0x28] sm:$0xff]   ;;  %s1087_s25 = sshra.s32 %s1423_s29, 7  ;;  %v2114_v61 = vmov 0   ;;  %vm1112_vm2 = vcmask 7168  }
 0x292   : > { %1450 = vmatpush3.bf16.msra.mxu0 %v1669_v46  ;;  %v1675_v52 = vld [vmem:[%s2344_s15 + $0x30] sm:$0xff]   ;;  %v1676_v53 = vld [vmem:[%s2344_s15 + $0x38] sm:$0xff]   ;;  %s1424_s18 = sshll.u32 %s1087_s25, 3  ;;  %v1414_v55 = vld [vmem:[%s2603_s28] ss:$0 sm:$0xff]  ;;  %1668 = vset.pattern.permute.xlu0 %v2114_v61  ;;  %p1425_p7 = scmp.ne.s32.totalorder %s2194_s0, 3 }
 0x293   : > { %1451 = vmatprep.subr.bf16.mxu0 %v2112_v47  ;;  %s1090_s4 = scalar_lea.vmem [#allocation6], %s1424_s18  ;;  %v1092_v62 = vld [vmem:[#allocation4] sm:$0xff]  ;;  %v1096_v8 = vld [vmem:[#allocation5] sm:$0xff]  ;;  %v2115_v13 = vmov (!%p1425_p7), 0  }
 0x296   : > { %1452 = vmatpush3.bf16.msra.mxu0 %v1670_v48  ;;  %v974_v54 = vld [vmem:[#allocation3] sm:$0xf] }
 0x297   : > { %1453 = vmatprep.subr.bf16.mxu0 %v2112_v47 }
 0x29a   : > { %1454 = vmatpush3.bf16.msra.mxu0 %v1671_v38 }
 0x29b   : > { %1455 = vmatprep.subr.bf16.mxu0 %v2112_v47 }
 0x29e   : > { %1456 = vmatpush3.bf16.msra.mxu0 %v1672_v49 }
 0x29f   : > { %1457 = vmatprep.subr.bf16.mxu0 %v2112_v47 }
 0x2a2   : > { %1458 = vmatpush3.bf16.msra.mxu0 %v1673_v50 }
 0x2a3   : > { %1459 = vmatprep.subr.bf16.mxu0 %v2112_v47 }
 0x2a6   : > { %1460 = vmatpush3.bf16.msra.mxu0 %v1674_v51 }
 0x2a7   : > { %1461 = vmatprep.subr.bf16.mxu0 %v2112_v47 }
 0x2aa   : > { %1462 = vmatpush3.bf16.msra.mxu0 %v1675_v52 }
 0x2ab   : > { %1463 = vmatprep.subr.bf16.mxu0 %v2112_v47 }
 0x2ae   : > { %1464 = vmatpush3.bf16.msra.mxu0 %v1676_v53 }
 0x2b1   : > { %1466 = vmatmul.mubr.bf16.vlgmr.msra.gmra.mrb[0].mxu0 %v974_v54 }
 0x384   : > { %v1080_v56 = vpop.f32.mrb[0].mxu0 }
 0x385   : > { %v1081_v57 = vadd.f32 %v1414_v55, %v1080_v56  ;;  %v1467_v58 = vpop.f32.mrb[1].mxu0 }
 0x386   : > { %v1083_v59 = vpop.f32.mrb[2].mxu0 }
 0x387   : > { %1091 = vst [vmem:[%s1090_s4] sm:$0xff] %v1081_v57  ;;  %1093 = vmax.xlane.f32.xlu0 %v1081_v57  ;;  %v1468_v60 = vpop.f32.mrb[3].mxu0 }
 0x38e   : > { %v1119_v18 = vld [vmem:[#allocation6] sm:$0xff] (!%p1425_p7)  ;;  %v1120_v19 = vld [vmem:[#allocation6 + $0x8] sm:$0xff] (!%p1425_p7)  ;;  %v1121_v20 = vld [vmem:[#allocation6 + $0x10] sm:$0xff] (!%p1425_p7) }
 0x38f   : > { %v1122_v21 = vld [vmem:[#allocation6 + $0x18] sm:$0xff] (!%p1425_p7) }
 0x414   : > { %v1094_v63 = vpop.xlane.xlu0 %1093 }
 0x415   : > { %v1095_v0 = vmax.f32 %v1092_v62, %v1094_v63 }
 0x417   : > { %v1097_v1 = vsub.f32 %v1092_v62, %v1095_v0  ;;  %1114 = vst.msk [vmem:[#allocation4] sm:$0xff] %vm1112_vm2, %v1095_v0  ;;  %1103 = vperm.xlu0 %1668, %v1095_v0  }
 0x419   : > { %v1098_v6 = vmul.f32 1.442695, %v1097_v1 }
 0x41b   : > { %1681 = vset.pattern.permute.xlu0 (!%p1425_p7), %v2115_v13 }
 0x41e   : > { %v1123_v15 = vld [vmem:[#allocation4] sm:$0xff] (!%p1425_p7) }
 0x496   : > { %v1104_v2 = vpop.permute.xlu0 %1103 }
 0x497   : > { %v1106_v3 = vsub.f32 %v1081_v57, %v1104_v2 }
 0x499   : > { %v1107_v4 = vmul.f32 1.442695, %v1106_v3 }
 0x49b   : > { %1677 = vpow2.f32 %v1107_v4 }
 0x49c   : > { %1679 = vpow2.f32 %v1098_v6 }
 0x4a5   : > { %v1678_v5 = vpop.eup %1677 }
 0x4a6   : > { %1109 = vadd.xlane.f32.xlu1 %v1678_v5  ;;  %v1680_v7 = vpop.eup %1679 }
 0x4a7   : > { %v1100_v9 = vmul.f32 %v1680_v7, %v1096_v8 }
 0x530   : > { %1118 = sbr.rel (%p1425_p7) target bundleno = 1489 (0x5d1), region = 92 }
 0x533   : > { %v1110_v10 = vpop.xlane.xlu1 %1109 }
 0x534   : > { %v1111_v11 = vadd.f32 %v1110_v10, %v1100_v9 }
 0x536   : > { %1113 = vst.msk [vmem:[#allocation5] sm:$0xff] %vm1112_vm2, %v1111_v11 }
 0x53d   : > { %v1124_v12 = vld [vmem:[#allocation5] sm:$0xff] }
 0x53e   : > { %1682 = vlog2.f32 %v1124_v12 }
 0x548   : > { %v1683_v14 = vpop.eup %1682 }
 0x549   : > { %v1126_v16 = vmul.f32 0.6931472, %v1683_v14 }
 0x54b   : > { %v1127_v17 = vadd.f32 %v1126_v16, %v1123_v15 }
 0x54d   : > { %1130 = vperm.xlu0 %1681, %v1127_v17  }
 0x5cc   : > { %v1131_v22 = vpop.permute.xlu0 %1130 }
 0x5cd   : > { %v1133_v23 = vsub.f32 %v1119_v18, %v1131_v22  ;;  %v1134_v24 = vsub.f32 %v1120_v19, %v1131_v22  ;;  %v1135_v25 = vsub.f32 %v1121_v20, %v1131_v22  ;;  %v1136_v26 = vsub.f32 %v1122_v21, %v1131_v22 }
 0x5cf   : > { %1137 = vst [vmem:[#allocation16] sm:$0xff] %v1133_v23  ;;  %1138 = vst [vmem:[#allocation16 + $0x8] sm:$0xff] %v1134_v24 }
 0x5d0   : > { %1139 = vst [vmem:[#allocation16 + $0x10] sm:$0xff] %v1135_v25  ;;  %1140 = vst [vmem:[#allocation16 + $0x18] sm:$0xff] %v1136_v26 }
 0x5d1 PF: > { %p1503_p10 = scmp.eq.s32.totalorder %s2194_s0, 3  ;;  %s2116_s15 = smov [#allocation16]  }
 0x5d2   : > { %s1148_s27 = sshll.u32 %s2116_s15, 4  ;;  %s2117_s11 = smov [#allocation17]   ;;  %s1149_s27 = int_to_ptr.vmem [resolvable:$true] %s1148_s27 }
 0x5d3   : > { %s1159_s13 = sshll.u32 %s2117_s11, 4  ;;  %s1972_s1 = scalar_lea.vmem %s1149_s27, 512  ;;  %s1160_s13 = int_to_ptr.vmem [resolvable:$true] %s1159_s13 }
 0x5d4   : > { %p1973_p0 = scmp.ne.s32.totalorder %s1149_s27, %s1972_s1  ;;  %p1979_p8 = scmp.lt.s32.totalorder %s1149_s27, %s1149_s27 }
 0x5d5   : > { %p1980_p12 = scmp.lt.s32.totalorder %s1972_s1, %s1972_s1 }
 0x5d6   : > { %p1974_p1 = pnand %p1973_p0, %p1503_p10 }
 0x5d7   : > { %p1981_p13 = por %p1980_p12, %p1979_p8 }
 0x5d8   : > { %p1975_p2 = pneg %p1974_p1 }
 0x5da   : > { %p1982_p4 = pnand %p1981_p13, %p1975_p2 }
 0x5dc   : > { %1985 = shalt.err (!%p1982_p4)
}
 0x5dd   : > { %s1986_s24 = scalar_lea.hbm %s2578_s7, 512 }
 0x5de   : > { %p1987_p11 = scmp.ne.s32.totalorder %s2578_s7, %s1986_s24  ;;  %p1992_p9 = scmp.lt.u32.totalorder %s1986_s24, %s2578_s7 }
 0x5e0   : > { %p1988_p3 = pnand %p1987_p11, %p1503_p10 }
 0x5e2   : > { %p1989_p6 = pneg %p1988_p3 }
 0x5e4   : > { %p1994_p5 = pnand %p1992_p9, %p1989_p6 }
 0x5e6   : > { %1997 = shalt.err (!%p1994_p5)
}
 0x5e7   : > { %1480 = dma.vmem_to_hbm [thread:$0]  (%p1503_p10), %s1149_s27, 512, %s2578_s7, [#allocation12]  }
 0x5e8   : > { %s1998_s29 = scalar_lea.vmem %s1160_s13, 128  ;;  %p2005_p2 = scmp.lt.s32.totalorder %s1160_s13, %s1160_s13 }
 0x5e9   : > { %p1999_p7 = scmp.ne.s32.totalorder %s1160_s13, %s1998_s29  ;;  %p2006_p8 = scmp.lt.s32.totalorder %s1998_s29, %s1998_s29 }
 0x5eb   : > { %p2000_p0 = pnand %p1999_p7, %p1503_p10  ;;  %p2007_p12 = por %p2006_p8, %p2005_p2 }
 0x5ed   : > { %p2001_p1 = pneg %p2000_p0 }
 0x5ef   : > { %p2008_p13 = pnand %p2007_p12, %p2001_p1 }
 0x5f1   : > { %2011 = shalt.err (!%p2008_p13)
}
 0x5f2   : > { %s2012_s14 = scalar_lea.hbm %s2579_s8, 128 }
 0x5f3   : > { %p2013_p4 = scmp.ne.s32.totalorder %s2579_s8, %s2012_s14  ;;  %p2018_p6 = scmp.lt.u32.totalorder %s2012_s14, %s2579_s8 }
 0x5f5   : > { %p2014_p11 = pnand %p2013_p4, %p1503_p10 }
 0x5f7   : > { %p2015_p3 = pneg %p2014_p11 }
 0x5f9   : > { %p2020_p9 = pnand %p2018_p6, %p2015_p3 }
 0x5fb   : > { %2023 = shalt.err (!%p2020_p9)
}
 0x5fc   : > { %1482 = dma.vmem_to_hbm [thread:$0]  (%p1503_p10), %s1160_s13, 128, %s2579_s8, [#allocation18]  }
 0x5fd   : > { %2071 = dma.done.wait (%p1503_p10), [#allocation12], 512  }
 0x5fe   : > { %2073 = vsyncadd (%p1503_p10), [#allocation12], 4294966784 }
 0x5ff   : > { %2075 = dma.done.wait (%p1503_p10), [#allocation18], 128  }
 0x600   : > { %2077 = vsyncadd (%p1503_p10), [#allocation18], 4294967168 }
 0x601 PF: > { %p24_p5 = scmp.ge.s32.totalorder %s2197_s19, 6   ;;  %s2604_s15 = smov %s2084_s16 }
 0x602   : > { %s2605_s16 = smov %s2088_s17  ;;  %s2606_s17 = smov %s2207_s22 }
 0x603   : > { %s2607_s18 = smov %s2197_s19  ;;  %26 = sbr.rel (!%p24_p5) target bundleno = 18 (0x12), region = 165 }
 0x60a   :  { %1176 = vsyncpa [#allocation11], 1 }
 0x60b   :  { %1178 = vsyncpa [#allocation11 + $0x1], 1 }
 0x60c   :  { %1179 = vsyncpa [#allocation14], 1 }
 0x60d   :  { %1180 = vsyncpa [#allocation12], 1 }
 0x60e   :  { %1182 = vsyncpa [#allocation12 + $0x1], 1 }
 0x60f   :  { %1183 = vsyncpa [#allocation18], 1 }
 0x610   :  { %1184 = vsyncmov [#allocation7] }
 0x613   :  { %s1185_s0 = vpop.sfrf %1184 }
 0x614   :  { %p1432_p10 = scmp.ne.s32.totalorder %s1185_s0, 0 }
 0x616   :  { %1189 = shalt.err (%p1432_p10)  }
 0x617   :  { %1191 = vsyncmov [#allocation7 + $0x1] }
 0x61a   :  { %s1192_s13 = vpop.sfrf %1191 }
 0x61b   :  { %p1433_p7 = scmp.ne.s32.totalorder %s1192_s13, 0 }
 0x61d   :  { %1196 = shalt.err (%p1433_p7)  }
 0x61e   :  { %1198 = vsyncmov [#allocation7 + $0x2] }
 0x621   :  { %s1199_s1 = vpop.sfrf %1198 }
 0x622   :  { %p1434_p0 = scmp.ne.s32.totalorder %s1199_s1, 0 }
 0x624   :  { %1203 = shalt.err (%p1434_p0)  }
 0x625   :  { %1205 = vsyncmov [#allocation7 + $0x3] }
 0x628   :  { %s1206_s19 = vpop.sfrf %1205 }
 0x629   :  { %p1435_p1 = scmp.ne.s32.totalorder %s1206_s19, 0 }
 0x62b   :  { %1210 = shalt.err (%p1435_p1)  }
 0x62c   :  { %1212 = vsyncmov [#allocation7 + $0x4] }
 0x62f   :  { %s1213_s3 = vpop.sfrf %1212 }
 0x630   :  { %p1436_p2 = scmp.ne.s32.totalorder %s1213_s3, 0 }
 0x632   :  { %1217 = shalt.err (%p1436_p2)  }
 0x633   :  { %1219 = vsyncmov [#allocation7 + $0x5] }
 0x636   :  { %s1220_s5 = vpop.sfrf %1219 }
 0x637   :  { %p1437_p8 = scmp.ne.s32.totalorder %s1220_s5, 0 }
 0x639   :  { %1224 = shalt.err (%p1437_p8)  }
 0x63a   :  { %1226 = vsyncmov [#allocation7 + $0x6] }
 0x63d   :  { %s1227_s6 = vpop.sfrf %1226 }
 0x63e   :  { %p1438_p12 = scmp.ne.s32.totalorder %s1227_s6, 0 }
 0x640   :  { %1231 = shalt.err (%p1438_p12)  }
 0x641   :  { %1233 = vsyncmov [#allocation7 + $0x7] }
 0x644   :  { %s1234_s7 = vpop.sfrf %1233 }
 0x645   :  { %p1439_p13 = scmp.ne.s32.totalorder %s1234_s7, 0 }
 0x647   :  { %1238 = shalt.err (%p1439_p13)  }

</bundles_post_ra>
